<compile_context>
chip_gen: v5e
topology: v5e:2x2
jax: 0.10.0
libtpu: 0.0.40
codegen_flags: <defaults>
</compile_context>

<pallas_src>
import math

import jax
import jax.numpy as jnp
import numpy as np
from jax import lax
from jax.experimental import pallas as pl
from jax.experimental.pallas import tpu as pltpu

# ----------------------------- configuration (small) ------------------------------
BATCH = 2
IN_CHANNELS = 1              # DiffusionVocoder default in_channels=1
T = 512                      # waveform length (multiple of hop and of 128)
MEL_N_FFT = 128
MEL_HOP = MEL_N_FFT // 4     # 32   (default: floor(n_fft) // 4)
MEL_WIN = MEL_N_FFT          # 128  (default: win_length = n_fft)
MEL_CHANNELS = 8
SAMPLE_RATE = 48000
N_FREQ = MEL_N_FFT // 2 + 1  # 65

BC = BATCH * IN_CHANNELS                  # rows after 'b c t -> (b c) 1 t'
PAD = (MEL_WIN - MEL_HOP) // 2            # 48: both the STFT reflect-pad and the
                                          # ConvTranspose1d crop -> they cancel out
RATIO = MEL_WIN // MEL_HOP                # 4 frames start inside every 128-chunk
CHUNK = RATIO * MEL_HOP                   # 128 = lane width (time chunking)
FREQ_PAD = 128                            # rfft bins zero-padded 65 -> 128
N_CHUNK = -(-(T + 2 * PAD) // CHUNK)      # 5 chunks (waveform zero-padded to 640)
ROWS = BC * N_CHUNK                       # 10 kernel rows = (bc, chunk)
N_FRAMES = 1 + (T + 2 * PAD - MEL_WIN) // MEL_HOP   # 16 STFT frames
HALF = RATIO * FREQ_PAD                   # 512 = re / im split point

assert CHUNK == 128 and MEL_WIN == 128
assert N_FRAMES == RATIO * (N_CHUNK - 1)
assert T % CHUNK == 0


# ----------------------------- parameter construction (host glue) -----------------
def _hz_to_mel_htk(f):
    return 2595.0 * np.log10(1.0 + f / 700.0)


def _mel_to_hz_htk(m):
    return 700.0 * (10.0 ** (m / 2595.0) - 1.0)


def melscale_fbanks(n_freqs, n_mels, sample_rate, f_min=0.0, f_max=None):
    # torchaudio.functional.melscale_fbanks(norm=None, mel_scale="htk")
    f_max = f_max if f_max is not None else float(sample_rate // 2)
    all_freqs = np.linspace(0.0, sample_rate // 2, n_freqs)
    m_pts = np.linspace(_hz_to_mel_htk(f_min), _hz_to_mel_htk(f_max), n_mels + 2)
    f_pts = _mel_to_hz_htk(m_pts)
    f_diff = f_pts[1:] - f_pts[:-1]
    slopes = f_pts[None, :] - all_freqs[:, None]
    down = (-1.0 * slopes[:, :-2]) / f_diff[:-1]
    up = slopes[:, 2:] / f_diff[1:]
    return np.maximum(0.0, np.minimum(down, up))          # (n_freqs, n_mels) float64


def build_params():
    key = jax.random.PRNGKey(0)
    k_w, _ = jax.random.split(key)

    # Hann window (torch.hann_window, periodic), folded into the DFT matrices.
    n = np.arange(MEL_WIN, dtype=np.float64)
    window = 0.5 - 0.5 * np.cos(2.0 * np.pi * n / MEL_WIN)

    # Windowed rDFT as real matmuls; frequency axis zero-padded 65 -> 128.
    f = np.arange(N_FREQ, dtype=np.float64)
    ang = 2.0 * np.pi * np.outer(n, f) / MEL_N_FFT         # (128, 65)
    cre = np.zeros((MEL_WIN, FREQ_PAD))
    cim = np.zeros((MEL_WIN, FREQ_PAD))
    cre[:, :N_FREQ] = window[:, None] * np.cos(ang)
    cim[:, :N_FREQ] = window[:, None] * (-np.sin(ang))

    # Frame l = RATIO*m + r starts at sample 128*m + 32*r, straddling time chunks
    # m and m+1.  Fold the framing into shifted DFT matrices:
    #   STFT(m, r) = chunk_m @ rows_down(C, 32r) + chunk_{m+1} @ rows_spill(C, 32r)
    def rows_down(mat, s):
        out = np.zeros_like(mat)
        out[s:] = mat[:mat.shape[0] - s]
        return out

    def rows_spill(mat, s):
        out = np.zeros_like(mat)
        if s:
            out[:s] = mat[mat.shape[0] - s:]
        return out

    dft_lo = np.concatenate([rows_down(cre, MEL_HOP * r) for r in range(RATIO)] +
                            [rows_down(cim, MEL_HOP * r) for r in range(RATIO)], axis=1)
    dft_hi = np.concatenate([rows_spill(cre, MEL_HOP * r) for r in range(RATIO)] +
                            [rows_spill(cim, MEL_HOP * r) for r in range(RATIO)], axis=1)
    # Stack so ONE K=256 matmul does both chunk contributions:
    #   [clo | chi] @ [dft_lo ; dft_hi]   -> (ROWS, 1024) = [re r=0..3 | im r=0..3]
    dft = np.concatenate([dft_lo, dft_hi], axis=0)                     # (256, 1024)

    # Mel filterbank + ConvTranspose1d weight fused into one matrix, then split per
    # residue r into "own chunk" / "spill into next chunk" overlap-add pieces.
    mel_fb = melscale_fbanks(N_FREQ, MEL_CHANNELS, SAMPLE_RATE)        # (65, 8)
    convt_w = 0.02 * jax.random.normal(k_w, (MEL_CHANNELS, MEL_WIN), jnp.float32)
    fused = np.zeros((FREQ_PAD, MEL_WIN))
    fused[:N_FREQ] = mel_fb @ np.asarray(convt_w, dtype=np.float64)    # (128, 128)

    def cols_right(mat, s):
        out = np.zeros_like(mat)
        out[:, s:] = mat[:, :mat.shape[1] - s]
        return out

    def cols_spill(mat, s):
        out = np.zeros_like(mat)
        if s:
            out[:, :s] = mat[:, mat.shape[1] - s:]
        return out

    oa = np.concatenate(
        [np.concatenate([cols_right(fused, MEL_HOP * r),
                         cols_spill(fused, MEL_HOP * r)], axis=1)
         for r in range(RATIO)], axis=0)                               # (512, 256)

    net_w = jnp.array([0.5, 0.3, 0.1], dtype=jnp.float32)   # synthetic net weights

    params = dict(
        # bf16 MXU weights (native MXU input on v5e/v6e/v7x), f32 accumulation.
        dft=jnp.asarray(dft, jnp.bfloat16),
        oa=jnp.asarray(oa, jnp.bfloat16),
        net_w=net_w,
    )
    ref = dict(
        window=jnp.asarray(window, jnp.float32),
        cos=jnp.asarray(np.cos(ang), jnp.float32),
        sin=jnp.asarray(-np.sin(ang), jnp.float32),
        mel_fb=jnp.asarray(mel_fb, jnp.float32),
        convt_w=convt_w,
    )
    return params, ref


# ----------------------------- fused Pallas kernel --------------------------------
# Row layout everywhere: (bc, time-chunk c) -> ROWS = BC * N_CHUNK rows, 128 lanes.
def vocoder_vdiffusion_kernel(xck_ref, noise_ref, dft_ref, oa_ref,
                              net_w_ref, sc_ref, loss_ref, spec_ref):
    f32 = jnp.float32
    bf16 = jnp.bfloat16

    # --- in-kernel index/masks (replace the host-side `mask` / `shift` inputs) ---
    row_id = lax.broadcasted_iota(jnp.int32, (ROWS, CHUNK), 0)
    lane_id = lax.broadcasted_iota(jnp.int32, (ROWS, CHUNK), 1)
    chunk_id = row_id
    for b in range(1, BC):                       # chunk index within each bc block
        chunk_id = jnp.where(row_id >= b * N_CHUNK, row_id - b * N_CHUNK, chunk_id)
    is_last_chunk = chunk_id == (N_CHUNK - 1)
    is_first_chunk = chunk_id == 0
    pos = chunk_id * CHUNK + lane_id             # position in the padded signal
    valid = (pos >= PAD) & (pos < PAD + T)       # positions of the original waveform

    x = xck_ref[...]                             # (ROWS, 128) padded waveform chunks

    # --- STFT: framing rebuilt in-kernel, fused into ONE K=256 matmul ------------
    # frame (m, r) straddles chunks m and m+1; last chunk starts no frames.
    clo = jnp.where(is_last_chunk, 0.0, x)                            # chunk m
    chi = jnp.where(is_last_chunk, 0.0, jnp.roll(x, -1, axis=0))      # chunk m+1
    lhs = jnp.concatenate([clo, chi], axis=1).astype(bf16)            # (ROWS, 256)
    s = jnp.dot(lhs, dft_ref[...], preferred_element_type=f32)        # (ROWS, 1024)
    re = s[:, :HALF]
    im = s[:, HALF:]
    # TODO(synk): padded freq lanes are structurally zero; add eps before sqrt if a
    # backward pass is ever added (NaN grad at exactly zero).
    mag = jnp.sqrt(re * re + im * im)                                 # |STFT|, (ROWS, 512)

    # --- mel fb + ConvTranspose1d + overlap-add, folded into one matmul ----------
    pq = jnp.dot(mag.astype(bf16), oa_ref[...],
                 preferred_element_type=f32)                          # (ROWS, 256)
    # pq[:, :128] -> contribution to own chunk, pq[:, 128:] -> spill into next chunk.
    # Row-shift via roll + iota mask (no degenerate MXU op, no extra HBM input).
    spill = jnp.roll(pq[:, CHUNK:], 1, axis=0)
    spec = pq[:, :CHUNK] + jnp.where(is_first_chunk, 0.0, spill)      # (ROWS, 128)
    spec_ref[...] = spec

    # --- VDiffusion v-objective loss (fused tail, all f32 elementwise) -----------
    # sigma / cos(sigma*pi/2) / sin(sigma*pi/2) arrive as per-bc SMEM scalars.
    sig = jnp.zeros((ROWS, CHUNK), f32)
    alpha = jnp.zeros((ROWS, CHUNK), f32)
    beta = jnp.zeros((ROWS, CHUNK), f32)
    for b in range(BC):                                   # BC is tiny & static
        in_b = (row_id >= b * N_CHUNK) & (row_id < (b + 1) * N_CHUNK)
        sig = jnp.where(in_b, sc_ref[0, b], sig)
        alpha = jnp.where(in_b, sc_ref[1, b], alpha)
        beta = jnp.where(in_b, sc_ref[2, b], beta)

    noise = noise_ref[...]                                # N(0,1), drawn in wrapper
    x_noisy = alpha * x + beta * noise
    v_target = alpha * noise - beta * x
    # TODO(synk): synthetic pointwise net standing in for the injected UNet.  Once a
    # real (non-pointwise) net is used, the pad positions must be cropped BEFORE the
    # net, not only masked before the mse.
    v_pred = net_w_ref[0] * x_noisy + net_w_ref[1] * spec + net_w_ref[2] * sig
    d = jnp.where(valid, v_pred - v_target, 0.0)          # mask out pad positions
    loss_ref[0, 0] = jnp.sum(d * d) * (1.0 / float(BC * 1 * T))


# ----------------------------- wrapper / forward -----------------------------------
@jax.jit
def diffusion_vocoder_forward(x, params, key):
    """x: (B, C, T) waveform -> (loss, spectrogram_flat).

    The torch module returns only the scalar v-diffusion loss; spectrogram_flat
    (B*C, T) is also surfaced so the fused kernel can be validated against a
    plain-JAX reference.
    """
    b, c, t = x.shape
    assert (b * c, t) == (BC, T)
    x2 = x.reshape(b * c, t)
    xp = jnp.pad(x2, ((0, 0), (PAD, PAD)), mode="reflect")            # (BC, T + 2*PAD)
    xp = jnp.pad(xp, ((0, 0), (0, N_CHUNK * CHUNK - (t + 2 * PAD))))  # zero-pad to 640
    xck = xp.reshape(ROWS, CHUNK)                                     # chunk layout

    k_sig, k_noise = jax.random.split(key)
    # NOTE: sigmas drawn per (b*c) row; identical to per-batch only because C == 1.
    sigmas = jax.random.uniform(k_sig, (b * c,), jnp.float32)         # UniformDistribution
    scalars = jnp.stack([sigmas,
                         jnp.cos(sigmas * (math.pi / 2.0)),
                         jnp.sin(sigmas * (math.pi / 2.0))], axis=0)  # (3, BC) SMEM
    # torch.randn_like(x): drawn on the host (hardware PRNG has no interpret path).
    noise = jax.random.normal(k_noise, (ROWS, CHUNK), jnp.float32)

    vmem = pltpu.MemorySpace.VMEM
    smem = pltpu.MemorySpace.SMEM
    loss2, spec_chunks = pl.pallas_call(
        vocoder_vdiffusion_kernel,
        out_shape=(jax.ShapeDtypeStruct((1, 1), jnp.float32),
                   jax.ShapeDtypeStruct((ROWS, CHUNK), jnp.float32)),
        in_specs=[pl.BlockSpec(memory_space=vmem),    # xck  (ROWS, 128) f32
                  pl.BlockSpec(memory_space=vmem),    # noise (ROWS, 128) f32
                  pl.BlockSpec(memory_space=vmem),    # dft  (256, 1024) bf16
                  pl.BlockSpec(memory_space=vmem),    # oa   (512, 256)  bf16
                  pl.BlockSpec(memory_space=smem),    # net_w (3,)
                  pl.BlockSpec(memory_space=smem)],   # scalars (3, BC)
        out_specs=(pl.BlockSpec(memory_space=smem),   # loss (1, 1)
                   pl.BlockSpec(memory_space=vmem)),  # spec (ROWS, 128)
        # ~8 MFLOP of matmul, ~0.8 MB of (mostly weight) bytes, a few K sqrt/trig:
        # hint XLA so surrounding pad/reshape work overlaps this tiny kernel.
        cost_estimate=pl.CostEstimate(flops=7_864_320,
                                      transcendentals=6_000,
                                      bytes_accessed=810_000),
    )(xck, noise, params["dft"], params["oa"], params["net_w"], scalars)

    spec_flat = spec_chunks.reshape(b * c, N_CHUNK * CHUNK)[:, PAD:PAD + t]
    return loss2[0, 0], spec_flat


# ----------------------------- plain-JAX reference (validation only) --------------
def reference_spec_flat(x2, ref):
    xp = jnp.pad(x2, ((0, 0), (PAD, PAD)), mode="reflect")
    idx = np.arange(N_FRAMES)[:, None] * MEL_HOP + np.arange(MEL_WIN)[None, :]
    frames = xp[:, idx] * ref["window"][None, None, :]                # (BC, 16, 128)
    re = jnp.einsum("blk,kf->blf", frames, ref["cos"])
    im = jnp.einsum("blk,kf->blf", frames, ref["sin"])
    mag = jnp.sqrt(re * re + im * im)
    mel = jnp.einsum("blf,fm->blm", mag, ref["mel_fb"])
    contrib = jnp.einsum("blm,mk->blk", mel, ref["convt_w"])          # (BC, 16, 128)
    y = jnp.zeros((x2.shape[0], (N_FRAMES - 1) * MEL_HOP + MEL_WIN), jnp.float32)
    for l in range(N_FRAMES):
        y = y.at[:, l * MEL_HOP:l * MEL_HOP + MEL_WIN].add(contrib[:, l])
    return y[:, PAD:PAD + T]


if __name__ == "__main__":
    params, ref = build_params()
    key = jax.random.PRNGKey(0)
    k_x, k_fwd = jax.random.split(key)
    x = jax.random.normal(k_x, (BATCH, IN_CHANNELS, T), jnp.float32)

    loss, spec_flat = diffusion_vocoder_forward(x, params, k_fwd)
    loss = jax.block_until_ready(loss)
    assert jnp.isfinite(loss), "loss is not finite"

    # Validate the fused mel -> ConvTranspose -> overlap-add path against plain JAX
    # (tolerance covers the bf16 MXU weights; accumulation is f32).
    spec_ref = reference_spec_flat(x.reshape(BC, T), ref)
    err = float(jnp.max(jnp.abs(spec_flat - spec_ref)))
    scale = float(jnp.max(jnp.abs(spec_ref)))
    assert err <= 0.05 * scale + 1e-3, f"spectrogram_flat mismatch: err={err}, scale={scale}"

    print("KERNEL_OK")
</pallas_src>

<mosaic_0001>
module attributes {stable_mosaic.version = 11 : i64} {
  func.func @vocoder_vdiffusion_kernel(%arg0: memref<10x128xf32, #tpu.memory_space<vmem>>, %arg1: memref<10x128xf32, #tpu.memory_space<vmem>>, %arg2: memref<256x1024xbf16, #tpu.memory_space<vmem>>, %arg3: memref<512x256xbf16, #tpu.memory_space<vmem>>, %arg4: memref<3xf32, #tpu.memory_space<smem>>, %arg5: memref<3x2xf32, #tpu.memory_space<smem>>, %arg6: memref<1x1xf32, #tpu.memory_space<smem>>, %arg7: memref<10x128xf32, #tpu.memory_space<vmem>>) attributes {dimension_semantics = [], scalar_prefetch = 0 : i64, scratch_operands = 0 : i64, tpu.core_type = #tpu.core_type<tc>} {
    %0 = tpu.iota {dimensions = array<i32: 0>} : vector<10x128xi32>
    %1 = tpu.iota {dimensions = array<i32: 1>} : vector<10x128xi32>
    %c5_i32 = arith.constant 5 : i32
    %2 = vector.broadcast %c5_i32 : i32 to vector<10x128xi32>
    %3 = arith.cmpi sge, %0, %2 : vector<10x128xi32>
    %c5_i32_0 = arith.constant 5 : i32
    %4 = vector.broadcast %c5_i32_0 : i32 to vector<10x128xi32>
    %5 = arith.subi %0, %4 : vector<10x128xi32>
    %6 = arith.select %3, %5, %0 : vector<10x128xi1>, vector<10x128xi32>
    %c4_i32 = arith.constant 4 : i32
    %7 = vector.broadcast %c4_i32 : i32 to vector<10x128xi32>
    %8 = arith.cmpi eq, %6, %7 : vector<10x128xi32>
    %c0_i32 = arith.constant 0 : i32
    %9 = vector.broadcast %c0_i32 : i32 to vector<10x128xi32>
    %10 = arith.cmpi eq, %6, %9 : vector<10x128xi32>
    %c128_i32 = arith.constant 128 : i32
    %11 = vector.broadcast %c128_i32 : i32 to vector<10x128xi32>
    %12 = arith.muli %6, %11 : vector<10x128xi32>
    %13 = arith.addi %12, %1 : vector<10x128xi32>
    %c48_i32 = arith.constant 48 : i32
    %14 = vector.broadcast %c48_i32 : i32 to vector<10x128xi32>
    %15 = arith.cmpi sge, %13, %14 : vector<10x128xi32>
    %c560_i32 = arith.constant 560 : i32
    %16 = vector.broadcast %c560_i32 : i32 to vector<10x128xi32>
    %17 = arith.cmpi slt, %13, %16 : vector<10x128xi32>
    %18 = arith.andi %15, %17 : vector<10x128xi1>
    %c0 = arith.constant 0 : index
    %c0_1 = arith.constant 0 : index
    %19 = vector.load %arg0[%c0, %c0_1] : memref<10x128xf32, #tpu.memory_space<vmem>>, vector<10x128xf32>
    %cst = arith.constant 0.000000e+00 : f32
    %20 = vector.broadcast %cst : f32 to vector<10x128xf32>
    %21 = arith.select %8, %20, %19 : vector<10x128xi1>, vector<10x128xf32>
    %22 = vector.extract_strided_slice %19 {offsets = [1, 0], sizes = [9, 128], strides = [1, 1]} : vector<10x128xf32> to vector<9x128xf32>
    %23 = vector.extract_strided_slice %19 {offsets = [0, 0], sizes = [1, 128], strides = [1, 1]} : vector<10x128xf32> to vector<1x128xf32>
    %24 = tpu.concatenate %22, %23 in 0 : vector<9x128xf32>, vector<1x128xf32> -> vector<10x128xf32>
    %cst_2 = arith.constant 0.000000e+00 : f32
    %25 = vector.broadcast %cst_2 : f32 to vector<10x128xf32>
    %26 = arith.select %8, %25, %24 : vector<10x128xi1>, vector<10x128xf32>
    %27 = tpu.concatenate %21, %26 in 1 : vector<10x128xf32>, vector<10x128xf32> -> vector<10x256xf32>
    %28 = arith.truncf %27 : vector<10x256xf32> to vector<10x256xbf16>
    %c0_3 = arith.constant 0 : index
    %c0_4 = arith.constant 0 : index
    %29 = vector.load %arg2[%c0_3, %c0_4] : memref<256x1024xbf16, #tpu.memory_space<vmem>>, vector<256x1024xbf16>
    %cst_5 = arith.constant dense<0.000000e+00> : vector<10x1024xf32>
    %30 = tpu.matmul %28, %29, %cst_5 {dimension_numbers = #tpu.dot_dimension_numbers<[1], [0], [0], [1], [0, 0, 1, 1], [], []>} : vector<10x256xbf16>, vector<256x1024xbf16>, vector<10x1024xf32> -> vector<10x1024xf32>
    %31 = vector.extract_strided_slice %30 {offsets = [0, 0], sizes = [10, 512], strides = [1, 1]} : vector<10x1024xf32> to vector<10x512xf32>
    %32 = vector.extract_strided_slice %30 {offsets = [0, 512], sizes = [10, 512], strides = [1, 1]} : vector<10x1024xf32> to vector<10x512xf32>
    %33 = arith.mulf %31, %31 : vector<10x512xf32>
    %34 = arith.mulf %32, %32 : vector<10x512xf32>
    %35 = arith.addf %33, %34 : vector<10x512xf32>
    %36 = math.sqrt %35 : vector<10x512xf32>
    %37 = arith.truncf %36 : vector<10x512xf32> to vector<10x512xbf16>
    %c0_6 = arith.constant 0 : index
    %c0_7 = arith.constant 0 : index
    %38 = vector.load %arg3[%c0_6, %c0_7] : memref<512x256xbf16, #tpu.memory_space<vmem>>, vector<512x256xbf16>
    %cst_8 = arith.constant dense<0.000000e+00> : vector<10x256xf32>
    %39 = tpu.matmul %37, %38, %cst_8 {dimension_numbers = #tpu.dot_dimension_numbers<[1], [0], [0], [1], [0, 0, 1, 1], [], []>} : vector<10x512xbf16>, vector<512x256xbf16>, vector<10x256xf32> -> vector<10x256xf32>
    %40 = vector.extract_strided_slice %39 {offsets = [0, 128], sizes = [10, 128], strides = [1, 1]} : vector<10x256xf32> to vector<10x128xf32>
    %41 = vector.extract_strided_slice %40 {offsets = [9, 0], sizes = [1, 128], strides = [1, 1]} : vector<10x128xf32> to vector<1x128xf32>
    %42 = vector.extract_strided_slice %40 {offsets = [0, 0], sizes = [9, 128], strides = [1, 1]} : vector<10x128xf32> to vector<9x128xf32>
    %43 = tpu.concatenate %41, %42 in 0 : vector<1x128xf32>, vector<9x128xf32> -> vector<10x128xf32>
    %44 = vector.extract_strided_slice %39 {offsets = [0, 0], sizes = [10, 128], strides = [1, 1]} : vector<10x256xf32> to vector<10x128xf32>
    %cst_9 = arith.constant 0.000000e+00 : f32
    %45 = vector.broadcast %cst_9 : f32 to vector<10x128xf32>
    %46 = arith.select %10, %45, %43 : vector<10x128xi1>, vector<10x128xf32>
    %47 = arith.addf %44, %46 : vector<10x128xf32>
    %c0_10 = arith.constant 0 : index
    %c0_11 = arith.constant 0 : index
    %48 = vector.load %arg7[%c0_10, %c0_11] : memref<10x128xf32, #tpu.memory_space<vmem>>, vector<10x128xf32>
    tpu.vector_store %arg7[%c0_10, %c0_11], %47 {strides = array<i32>} : memref<10x128xf32, #tpu.memory_space<vmem>>, vector<10x128xf32>,
    %cst_12 = arith.constant 0.000000e+00 : f32
    %49 = vector.broadcast %cst_12 : f32 to vector<10x128xf32>
    %cst_13 = arith.constant 0.000000e+00 : f32
    %50 = vector.broadcast %cst_13 : f32 to vector<10x128xf32>
    %cst_14 = arith.constant 0.000000e+00 : f32
    %51 = vector.broadcast %cst_14 : f32 to vector<10x128xf32>
    %c0_i32_15 = arith.constant 0 : i32
    %52 = vector.broadcast %c0_i32_15 : i32 to vector<10x128xi32>
    %53 = arith.cmpi sge, %0, %52 : vector<10x128xi32>
    %c5_i32_16 = arith.constant 5 : i32
    %54 = vector.broadcast %c5_i32_16 : i32 to vector<10x128xi32>
    %55 = arith.cmpi slt, %0, %54 : vector<10x128xi32>
    %56 = arith.andi %53, %55 : vector<10x128xi1>
    %c0_17 = arith.constant 0 : index
    %c0_18 = arith.constant 0 : index
    %57 = memref.load %arg5[%c0_17, %c0_18] : memref<3x2xf32, #tpu.memory_space<smem>>
    %58 = vector.broadcast %57 : f32 to vector<10x128xf32>
    %59 = arith.select %56, %58, %49 : vector<10x128xi1>, vector<10x128xf32>
    %c1 = arith.constant 1 : index
    %c0_19 = arith.constant 0 : index
    %60 = memref.load %arg5[%c1, %c0_19] : memref<3x2xf32, #tpu.memory_space<smem>>
    %61 = vector.broadcast %60 : f32 to vector<10x128xf32>
    %62 = arith.select %56, %61, %50 : vector<10x128xi1>, vector<10x128xf32>
    %c2 = arith.constant 2 : index
    %c0_20 = arith.constant 0 : index
    %63 = memref.load %arg5[%c2, %c0_20] : memref<3x2xf32, #tpu.memory_space<smem>>
    %64 = vector.broadcast %63 : f32 to vector<10x128xf32>
    %65 = arith.select %56, %64, %51 : vector<10x128xi1>, vector<10x128xf32>
    %c5_i32_21 = arith.constant 5 : i32
    %66 = vector.broadcast %c5_i32_21 : i32 to vector<10x128xi32>
    %67 = arith.cmpi sge, %0, %66 : vector<10x128xi32>
    %c10_i32 = arith.constant 10 : i32
    %68 = vector.broadcast %c10_i32 : i32 to vector<10x128xi32>
    %69 = arith.cmpi slt, %0, %68 : vector<10x128xi32>
    %70 = arith.andi %67, %69 : vector<10x128xi1>
    %c0_22 = arith.constant 0 : index
    %c1_23 = arith.constant 1 : index
    %71 = memref.load %arg5[%c0_22, %c1_23] : memref<3x2xf32, #tpu.memory_space<smem>>
    %72 = vector.broadcast %71 : f32 to vector<10x128xf32>
    %73 = arith.select %70, %72, %59 : vector<10x128xi1>, vector<10x128xf32>
    %c1_24 = arith.constant 1 : index
    %c1_25 = arith.constant 1 : index
    %74 = memref.load %arg5[%c1_24, %c1_25] : memref<3x2xf32, #tpu.memory_space<smem>>
    %75 = vector.broadcast %74 : f32 to vector<10x128xf32>
    %76 = arith.select %70, %75, %62 : vector<10x128xi1>, vector<10x128xf32>
    %c2_26 = arith.constant 2 : index
    %c1_27 = arith.constant 1 : index
    %77 = memref.load %arg5[%c2_26, %c1_27] : memref<3x2xf32, #tpu.memory_space<smem>>
    %78 = vector.broadcast %77 : f32 to vector<10x128xf32>
    %79 = arith.select %70, %78, %65 : vector<10x128xi1>, vector<10x128xf32>
    %c0_28 = arith.constant 0 : index
    %c0_29 = arith.constant 0 : index
    %80 = vector.load %arg1[%c0_28, %c0_29] : memref<10x128xf32, #tpu.memory_space<vmem>>, vector<10x128xf32>
    %81 = arith.mulf %76, %19 : vector<10x128xf32>
    %82 = arith.mulf %79, %80 : vector<10x128xf32>
    %83 = arith.addf %81, %82 : vector<10x128xf32>
    %84 = arith.mulf %76, %80 : vector<10x128xf32>
    %85 = arith.mulf %79, %19 : vector<10x128xf32>
    %86 = arith.subf %84, %85 : vector<10x128xf32>
    %c0_30 = arith.constant 0 : index
    %87 = memref.load %arg4[%c0_30] : memref<3xf32, #tpu.memory_space<smem>>
    %88 = vector.broadcast %87 : f32 to vector<10x128xf32>
    %89 = arith.mulf %88, %83 : vector<10x128xf32>
    %c1_31 = arith.constant 1 : index
    %90 = memref.load %arg4[%c1_31] : memref<3xf32, #tpu.memory_space<smem>>
    %91 = vector.broadcast %90 : f32 to vector<10x128xf32>
    %92 = arith.mulf %91, %47 : vector<10x128xf32>
    %93 = arith.addf %89, %92 : vector<10x128xf32>
    %c2_32 = arith.constant 2 : index
    %94 = memref.load %arg4[%c2_32] : memref<3xf32, #tpu.memory_space<smem>>
    %95 = vector.broadcast %94 : f32 to vector<10x128xf32>
    %96 = arith.mulf %95, %73 : vector<10x128xf32>
    %97 = arith.addf %93, %96 : vector<10x128xf32>
    %98 = arith.subf %97, %86 : vector<10x128xf32>
    %cst_33 = arith.constant 0.000000e+00 : f32
    %99 = vector.broadcast %cst_33 : f32 to vector<10x128xf32>
    %100 = arith.select %18, %98, %99 : vector<10x128xi1>, vector<10x128xf32>
    %101 = arith.mulf %100, %100 : vector<10x128xf32>
    %102 = vector.shape_cast %101 : vector<10x128xf32> to vector<1x10x128xf32>
    %cst_34 = arith.constant dense<0.000000e+00> : vector<1xf32>
    %103 = vector.multi_reduction <add>, %102, %cst_34 [1, 2] : vector<1x10x128xf32> to vector<1xf32>
    %104 = vector.shape_cast %103 : vector<1xf32> to vector<1x1x1xf32>
    %105 = vector.extract %104[0, 0, 0] : f32 from vector<1x1x1xf32>
    %cst_35 = arith.constant 9.765625E-4 : f32
    %106 = arith.mulf %105, %cst_35 : f32
    %c0_36 = arith.constant 0 : index
    %c0_37 = arith.constant 0 : index
    %107 = memref.load %arg6[%c0_36, %c0_37] : memref<1x1xf32, #tpu.memory_space<smem>>
    memref.store %106, %arg6[%c0_36, %c0_37] : memref<1x1xf32, #tpu.memory_space<smem>>
    return
  }
}

</mosaic_0001>

<bundles_post_ra>
// kernel: diffusion_vocoder_forward.11
= control target key start
LH: loop header
LB: loop body
LE: loop exit
PB: predicated region body
PF: predicated region fallthrough
CT: control target
= control target key end

     0   :  { %13 = vsyncpa [#allocation3], 0  ;;  %s3367_s0 = inlined_call_operand.vmem [shape: f32[10,128], index: 0, kind: input, shape index: {}]   ;;  %s3368_s1 = inlined_call_operand.vmem [shape: f32[10,128], index: 1, kind: input, shape index: {}]   ;;  %s3369_s2 = inlined_call_operand.hbm [shape: bf16[256,1024], index: 2, kind: input, shape index: {}]   ;;  %s3370_s3 = inlined_call_operand.hbm [shape: bf16[512,256], index: 3, kind: input, shape index: {}]   ;;  %s3371_s4 = inlined_call_operand.vmem [shape: f32[3], index: 4, kind: input, shape index: {}]   ;;  %s3372_s5 = inlined_call_operand.vmem [shape: f32[3,2], index: 5, kind: input, shape index: {}]   ;;  %s3373_s6 = inlined_call_operand.hbm [shape: f32[1,1], index: 6, kind: output, shape index: {0}]   ;;  %s3374_s7 = inlined_call_operand.vmem [shape: f32[10,128], index: 7, kind: output, shape index: {1}]  }
   0x1   :  { %14 = vsyncpa [#allocation7], 0 }
   0x2   :  { %15 = vsyncpa [#allocation5], 0 }
   0x3   :  { %16 = vsyncpa [#allocation10], 0 }
   0x4   :  { %17 = vsyncpa [#allocation4], 0  ;;  %s26_s26 = sshll.u32 %s3369_s2, 4  ;;  %s3038_s27 = smov [#allocation2]   ;;  %s27_s26 = int_to_ptr.hbm [resolvable:$true] %s26_s26 }
   0x5   :  { %s28_s28 = sshll.u32 %s3038_s27, 4  ;;  %s39_s8 = sshll.u32 %s3370_s3, 4  ;;  %s29_s28 = int_to_ptr.vmem [resolvable:$true] %s28_s28  ;;  %s40_s8 = int_to_ptr.hbm [resolvable:$true] %s39_s8 }
   0x6   :  { %s3039_s9 = smov 512   ;;  %s3040_s10 = smov 32  }
   0x7   :  { %34 = dma.hbm_to_vmem [thread:$0]  %s27_s26, 16384, %s29_s28, [#allocation3], %s3039_s9, %s3039_s9, %s3040_s10  }
   0x8   :  { %s3041_s11 = smov [#allocation6]   ;;  %s3042_s13 = smov 128  }
   0x9   :  { %s41_s12 = sshll.u32 %s3041_s11, 4  ;;  %s3043_s14 = smov 8   ;;  %s42_s12 = int_to_ptr.vmem [resolvable:$true] %s41_s12 }
   0xa   :  { %47 = dma.hbm_to_vmem [thread:$0]  %s40_s8, 8192, %s42_s12, [#allocation7], %s3042_s13, %s3042_s13, %s3043_s14  }
   0xb   :  { %s53_s16 = sshll.u32 %s3371_s4, 4  ;;  %s62_s19 = sshll.u32 %s3372_s5, 4  ;;  %s54_s16 = int_to_ptr.vmem [resolvable:$true] %s53_s16  ;;  %s63_s19 = int_to_ptr.vmem [resolvable:$true] %s62_s19 }
   0xc   :  { %s3044_s3 = smov [#allocation8]   ;;  %s3045_s20 = smov [#allocation9]  }
   0xd   :  { %56 = dma.vmem_to_smem %s54_s16, 16, %s3044_s3, [#allocation5]  }
   0xe   :  { %65 = dma.vmem_to_smem %s63_s19, 64, %s3045_s20, [#allocation10]  }
   0xf   :  { %3028 = dma.done.wait [#allocation3], 16384  }
  0x10   :  { %3029 = vsyncadd [#allocation3], 4294950912 }
  0x11   :  { %3030 = dma.done.wait [#allocation7], 8192  }
  0x12   :  { %3031 = vsyncadd [#allocation7], 4294959104 }
  0x13   :  { %3032 = dma.done.wait [#allocation5], 16  }
  0x14   :  { %3033 = vsyncadd [#allocation5], 4294967280 }
  0x15   :  { %3034 = dma.done.wait [#allocation10], 64  }
  0x16   :  { %3035 = vsyncadd [#allocation10], 4294967232 }
  0x17   :  { %82 = sfence }
  0x18   :  { %v2092_v0 = vld [vmem:[#allocation2 + $0x1c0] sm:$0xf]  ;;  %v2777_v5 = vld [vmem:[#allocation2 + $0x1c4] sm:$0xf]  ;;  %vm114_vm0 = vcmask 1046528   ;;  %vm122_vm2 = vcmask 1040384  }
  0x19   :  { %v2781_v1 = vld [vmem:[#allocation2 + $0x1dc] sm:$0xf0]  ;;  %v2094_v6 = vld [vmem:[#allocation2 + $0x1e0] sm:$0xf0]  ;;  %s2714_s23 = sld [smem:[#allocation9 + $0x80]]  ;;  %s1846_s19 = sshll.u32 %s3373_s6, 4  ;;  %s1847_s19 = int_to_ptr.hbm [resolvable:$true] %s1846_s19 }
  0x1a   :  { %v2348_v2 = vld [vmem:[#allocation2 + $0x3c0] sm:$0xf]  ;;  %v2093_v3 = vor.u32 %v2781_v1, %v2092_v0  ;;  %v2097_v8 = vor.u32 %v2777_v5, %v2094_v6  ;;  %v2841_v9 = vld [vmem:[#allocation2 + $0x3c4] sm:$0xf]  ;;  %s2715_s24 = sld [smem:[#allocation9 + $0x100]]  ;;  %s3046_s4 = smov [#allocation11]  }
  0x1b   :  { %v2845_v4 = vld [vmem:[#allocation2 + $0x3dc] sm:$0xf0]  ;;  %v2350_v10 = vld [vmem:[#allocation2 + $0x3e0] sm:$0xf0]  ;;  %s2717_s25 = sld [smem:[#allocation9 + $0x81]] }
  0x1c   :  { %v2349_v7 = vor.u32 %v2845_v4, %v2348_v2  ;;  %v2060_v11 = vld [vmem:[#allocation2 + $0x180] sm:$0xf]  ;;  %896 = vmatpush.bf16.msra.mxu0 %v2093_v3  ;;  %v2353_v12 = vor.u32 %v2841_v9, %v2350_v10  ;;  %924 = vmatpush.bf16.msra.mxu2 %v2097_v8  ;;  %v2769_v18 = vld [vmem:[#allocation2 + $0x184] sm:$0xf]  ;;  %s2718_s26 = sld [smem:[#allocation9 + $0x101]] }
  0x1d   :  { %v2773_v13 = vld [vmem:[#allocation2 + $0x19c] sm:$0xf0]  ;;  %v2062_v19 = vld [vmem:[#allocation2 + $0x1a0] sm:$0xf0]  ;;  %s3304_s27 = sld [smem:[#allocation9]] }
  0x1e   :  { %v2316_v14 = vld [vmem:[#allocation2 + $0x380] sm:$0xf]  ;;  %910 = vmatpush.bf16.msra.mxu1 %v2349_v7  ;;  %v2061_v16 = vor.u32 %v2773_v13, %v2060_v11  ;;  %v2833_v20 = vld [vmem:[#allocation2 + $0x384] sm:$0xf]  ;;  %938 = vmatpush.bf16.msra.mxu3 %v2353_v12  ;;  %v2065_v21 = vor.u32 %v2769_v18, %v2062_v19  ;;  %s3311_s28 = sld [smem:[#allocation8 + $0x1]] }
  0x1f   :  { %v2837_v15 = vld [vmem:[#allocation2 + $0x39c] sm:$0xf0]  ;;  %v2318_v22 = vld [vmem:[#allocation2 + $0x3a0] sm:$0xf0]  ;;  %s3313_s29 = sld [smem:[#allocation9 + $0x1]] }
  0x20   :  { %v2317_v17 = vor.u32 %v2837_v15, %v2316_v14  ;;  %v2028_v23 = vld [vmem:[#allocation2 + $0x140] sm:$0xf]  ;;  %v2321_v25 = vor.u32 %v2833_v20, %v2318_v22  ;;  %v2761_v28 = vld [vmem:[#allocation2 + $0x144] sm:$0xf]  ;;  %897 = vmatpush.bf16.msra.mxu0 %v2061_v16  ;;  %925 = vmatpush.bf16.msra.mxu2 %v2065_v21  ;;  %s3329_s11 = sld [smem:[#allocation8]] }
  0x21   :  { %v2765_v24 = vld [vmem:[#allocation2 + $0x15c] sm:$0xf0]  ;;  %v2030_v30 = vld [vmem:[#allocation2 + $0x160] sm:$0xf0] }
  0x22   :  { %v2284_v26 = vld [vmem:[#allocation2 + $0x340] sm:$0xf]  ;;  %v2029_v29 = vor.u32 %v2765_v24, %v2028_v23  ;;  %v2825_v31 = vld [vmem:[#allocation2 + $0x344] sm:$0xf]  ;;  %911 = vmatpush.bf16.msra.mxu1 %v2317_v17  ;;  %v2033_v34 = vor.u32 %v2761_v28, %v2030_v30  ;;  %939 = vmatpush.bf16.msra.mxu3 %v2321_v25  ;;  %v2100_v28 = vld [vmem:[#allocation2 + $0x1c8] sm:$0xf] }
  0x23   :  { %v2829_v27 = vld [vmem:[#allocation2 + $0x35c] sm:$0xf0]  ;;  %v2286_v32 = vld [vmem:[#allocation2 + $0x360] sm:$0xf0]  ;;  %v2356_v30 = vld [vmem:[#allocation2 + $0x3c8] sm:$0xf] }
  0x24   :  { %v2285_v33 = vor.u32 %v2829_v27, %v2284_v26  ;;  %v1996_v35 = vld [vmem:[#allocation2 + $0x100] sm:$0xf]  ;;  %v2289_v38 = vor.u32 %v2825_v31, %v2286_v32  ;;  %v2753_v40 = vld [vmem:[#allocation2 + $0x104] sm:$0xf]  ;;  %898 = vmatpush.bf16.msra.mxu0 %v2029_v29  ;;  %926 = vmatpush.bf16.msra.mxu2 %v2033_v34  ;;  %v2782_v29 = vld [vmem:[#allocation2 + $0x1e4] sm:$0xf0] }
  0x25   :  { %v2757_v36 = vld [vmem:[#allocation2 + $0x11c] sm:$0xf0]  ;;  %v1998_v41 = vld [vmem:[#allocation2 + $0x120] sm:$0xf0]  ;;  %v2846_v32 = vld [vmem:[#allocation2 + $0x3e4] sm:$0xf0] }
  0x26   :  { %v2252_v37 = vld [vmem:[#allocation2 + $0x300] sm:$0xf]  ;;  %v2817_v42 = vld [vmem:[#allocation2 + $0x304] sm:$0xf]  ;;  %v1997_v44 = vor.u32 %v2757_v36, %v1996_v35  ;;  %912 = vmatpush.bf16.msra.mxu1 %v2285_v33  ;;  %v2001_v46 = vor.u32 %v2753_v40, %v1998_v41  ;;  %940 = vmatpush.bf16.msra.mxu3 %v2289_v38  ;;  %v2778_v33 = vld [vmem:[#allocation2 + $0x1cc] sm:$0xf]  ;;  %v2101_v40 = vor.u32 %v2782_v29, %v2100_v28 }
  0x27   :  { %v2821_v39 = vld [vmem:[#allocation2 + $0x31c] sm:$0xf0]  ;;  %v2254_v43 = vld [vmem:[#allocation2 + $0x320] sm:$0xf0]  ;;  %v2102_v34 = vld [vmem:[#allocation2 + $0x1e8] sm:$0xf0]  ;;  %v2357_v41 = vor.u32 %v2846_v32, %v2356_v30 }
  0x28   :  { %v2253_v45 = vor.u32 %v2821_v39, %v2252_v37  ;;  %v1964_v47 = vld [vmem:[#allocation2 + $0xc0] sm:$0xf]  ;;  %v2257_v50 = vor.u32 %v2817_v42, %v2254_v43  ;;  %v2745_v52 = vld [vmem:[#allocation2 + $0xc4] sm:$0xf]  ;;  %899 = vmatpush.bf16.msra.mxu0 %v1997_v44  ;;  %927 = vmatpush.bf16.msra.mxu2 %v2001_v46  ;;  %v2842_v37 = vld [vmem:[#allocation2 + $0x3cc] sm:$0xf]  ;;  %v2105_v42 = vor.u32 %v2778_v33, %v2102_v34 }
  0x29   :  { %v2749_v48 = vld [vmem:[#allocation2 + $0xdc] sm:$0xf0]  ;;  %v1966_v53 = vld [vmem:[#allocation2 + $0xe0] sm:$0xf0]  ;;  %v2358_v38 = vld [vmem:[#allocation2 + $0x3e8] sm:$0xf0] }
  0x2a   :  { %v2220_v49 = vld [vmem:[#allocation2 + $0x2c0] sm:$0xf]  ;;  %v2809_v54 = vld [vmem:[#allocation2 + $0x2c4] sm:$0xf]  ;;  %v1965_v56 = vor.u32 %v2749_v48, %v1964_v47  ;;  %913 = vmatpush.bf16.msra.mxu1 %v2253_v45  ;;  %v1969_v58 = vor.u32 %v2745_v52, %v1966_v53  ;;  %941 = vmatpush.bf16.msra.mxu3 %v2257_v50  ;;  %v2068_v43 = vld [vmem:[#allocation2 + $0x188] sm:$0xf]  ;;  %v2361_v46 = vor.u32 %v2842_v37, %v2358_v38 }
  0x2b   :  { %v2813_v51 = vld [vmem:[#allocation2 + $0x2dc] sm:$0xf0]  ;;  %v2222_v55 = vld [vmem:[#allocation2 + $0x2e0] sm:$0xf0]  ;;  %v2774_v44 = vld [vmem:[#allocation2 + $0x1a4] sm:$0xf0] }
  0x2c   :  { %v2221_v57 = vor.u32 %v2813_v51, %v2220_v49  ;;  %v1932_v59 = vld [vmem:[#allocation2 + $0x80] sm:$0xf]  ;;  %v2225_v62 = vor.u32 %v2809_v54, %v2222_v55  ;;  %v2737_v0 = vld [vmem:[#allocation2 + $0x84] sm:$0xf]  ;;  %900 = vmatpush.bf16.msra.mxu0 %v1965_v56  ;;  %928 = vmatpush.bf16.msra.mxu2 %v1969_v58  ;;  %v2324_v45 = vld [vmem:[#allocation2 + $0x388] sm:$0xf]  ;;  %v2069_v52 = vor.u32 %v2774_v44, %v2068_v43  ;;  %v83_v55 = vlaneseq }
  0x2d   :  { %v2741_v60 = vld [vmem:[#allocation2 + $0x9c] sm:$0xf0]  ;;  %v1934_v1 = vld [vmem:[#allocation2 + $0xa0] sm:$0xf0]  ;;  %v2838_v47 = vld [vmem:[#allocation2 + $0x3a4] sm:$0xf0] }
  0x2e   :  { %v2188_v61 = vld [vmem:[#allocation2 + $0x280] sm:$0xf]  ;;  %v2801_v2 = vld [vmem:[#allocation2 + $0x284] sm:$0xf]  ;;  %v1933_v4 = vor.u32 %v2741_v60, %v1932_v59  ;;  %914 = vmatpush.bf16.msra.mxu1 %v2221_v57  ;;  %v1937_v6 = vor.u32 %v2737_v0, %v1934_v1  ;;  %942 = vmatpush.bf16.msra.mxu3 %v2225_v62  ;;  %v2770_v48 = vld [vmem:[#allocation2 + $0x18c] sm:$0xf]  ;;  %v2325_v56 = vor.u32 %v2838_v47, %v2324_v45 }
  0x2f   :  { %v2805_v63 = vld [vmem:[#allocation2 + $0x29c] sm:$0xf0]  ;;  %v2190_v3 = vld [vmem:[#allocation2 + $0x2a0] sm:$0xf0]  ;;  %v2070_v49 = vld [vmem:[#allocation2 + $0x1a8] sm:$0xf0] }
  0x30   :  { %v2189_v5 = vor.u32 %v2805_v63, %v2188_v61  ;;  %v1900_v7 = vld [vmem:[#allocation2 + $0x40] sm:$0xf]  ;;  %v2193_v10 = vor.u32 %v2801_v2, %v2190_v3  ;;  %v2729_v12 = vld [vmem:[#allocation2 + $0x44] sm:$0xf]  ;;  %901 = vmatpush.bf16.msra.mxu0 %v1933_v4  ;;  %929 = vmatpush.bf16.msra.mxu2 %v1937_v6  ;;  %v2834_v50 = vld [vmem:[#allocation2 + $0x38c] sm:$0xf]  ;;  %v2073_v57 = vor.u32 %v2770_v48, %v2070_v49 }
  0x31   :  { %v2733_v8 = vld [vmem:[#allocation2 + $0x5c] sm:$0xf0]  ;;  %v1902_v13 = vld [vmem:[#allocation2 + $0x60] sm:$0xf0]  ;;  %v2326_v51 = vld [vmem:[#allocation2 + $0x3a8] sm:$0xf0] }
  0x32   :  { %v2156_v9 = vld [vmem:[#allocation2 + $0x240] sm:$0xf]  ;;  %v2793_v14 = vld [vmem:[#allocation2 + $0x244] sm:$0xf]  ;;  %v1901_v16 = vor.u32 %v2733_v8, %v1900_v7  ;;  %915 = vmatpush.bf16.msra.mxu1 %v2189_v5  ;;  %v1905_v20 = vor.u32 %v2729_v12, %v1902_v13  ;;  %943 = vmatpush.bf16.msra.mxu3 %v2193_v10  ;;  %v2036_v53 = vld [vmem:[#allocation2 + $0x148] sm:$0xf]  ;;  %v2329_v61 = vor.u32 %v2834_v50, %v2326_v51 }
  0x33   :  { %v2797_v11 = vld [vmem:[#allocation2 + $0x25c] sm:$0xf0]  ;;  %v2158_v15 = vld [vmem:[#allocation2 + $0x260] sm:$0xf0]  ;;  %v2766_v54 = vld [vmem:[#allocation2 + $0x164] sm:$0xf0] }
  0x34   :  { %v1868_v17 = vld [vmem:[#allocation2] sm:$0xf]  ;;  %v2157_v19 = vor.u32 %v2797_v11, %v2156_v9  ;;  %v2721_v23 = vld [vmem:[#allocation2 + $0x4] sm:$0xf]  ;;  %v2161_v24 = vor.u32 %v2793_v14, %v2158_v15  ;;  %902 = vmatpush.bf16.msra.mxu0 %v1901_v16  ;;  %930 = vmatpush.bf16.msra.mxu2 %v1905_v20  ;;  %v2292_v58 = vld [vmem:[#allocation2 + $0x348] sm:$0xf]  ;;  %v2037_v3 = vor.u32 %v2766_v54, %v2036_v53 }
  0x35   :  { %v2725_v18 = vld [vmem:[#allocation2 + $0x1c] sm:$0xf0]  ;;  %v1870_v25 = vld [vmem:[#allocation2 + $0x20] sm:$0xf0]  ;;  %v2830_v59 = vld [vmem:[#allocation2 + $0x364] sm:$0xf0] }
  0x36   :  { %v2124_v21 = vld [vmem:[#allocation2 + $0x200] sm:$0xf]  ;;  %v2785_v26 = vld [vmem:[#allocation2 + $0x204] sm:$0xf]  ;;  %v1869_v31 = vor.u32 %v2725_v18, %v1868_v17  ;;  %916 = vmatpush.bf16.msra.mxu1 %v2157_v19  ;;  %v1873_v36 = vor.u32 %v2721_v23, %v1870_v25  ;;  %944 = vmatpush.bf16.msra.mxu3 %v2161_v24  ;;  %v2762_v60 = vld [vmem:[#allocation2 + $0x14c] sm:$0xf]  ;;  %v2293_v4 = vor.u32 %v2830_v59, %v2292_v58 }
  0x37   :  { %v2789_v22 = vld [vmem:[#allocation2 + $0x21c] sm:$0xf0]  ;;  %v2126_v27 = vld [vmem:[#allocation2 + $0x220] sm:$0xf0]  ;;  %v2038_v62 = vld [vmem:[#allocation2 + $0x168] sm:$0xf0] }
  0x38   :  { %v2125_v35 = vor.u32 %v2789_v22, %v2124_v21  ;;  %v2129_v39 = vor.u32 %v2785_v26, %v2126_v27  ;;  %903 = vmatpush.bf16.msra.mxu0 %v1869_v31  ;;  %931 = vmatpush.bf16.msra.mxu2 %v1873_v36  ;;  %v2826_v63 = vld [vmem:[#allocation2 + $0x34c] sm:$0xf]  ;;  %v2004_v1 = vld [vmem:[#allocation2 + $0x108] sm:$0xf]  ;;  %v3100_v6 = vshrl.u32 %v83_v55, 7  ;;  %v108_v7 = vld [vmem:[%s3367_s0] sm:$0xff]  ;;  %v2041_v9 = vor.u32 %v2762_v60, %v2038_v62 }
  0x39   :  { %v2294_v0 = vld [vmem:[#allocation2 + $0x368] sm:$0xf0]  ;;  %v2758_v2 = vld [vmem:[#allocation2 + $0x124] sm:$0xf0]  ;;  %v115_v13 = vrot.slane %v108_v7, 1  ;;  %v120_v21 = vrot.slane %v108_v7, 7 }
  0x3a   :  { %917 = vmatpush.bf16.msra.mxu1 %v2125_v35  ;;  %945 = vmatpush.bf16.msra.mxu3 %v2129_v39  ;;  %v2260_v5 = vld [vmem:[#allocation2 + $0x308] sm:$0xf]  ;;  %v2297_v10 = vor.u32 %v2826_v63, %v2294_v0  ;;  %v2754_v12 = vld [vmem:[#allocation2 + $0x10c] sm:$0xf]  ;;  %v3109_v15 = vadd.s32 8, %v3100_v6  ;;  %vm88_vm1 = vcmp.ge.s32.totalorder %v3100_v6, 5  ;;  %v2005_v18 = vor.u32 %v2758_v2, %v2004_v1 }
  0x3b   :  { %v109_v8 = vld [vmem:[%s3367_s0 + $0x8] sm:$0x3]  ;;  %v2006_v14 = vld [vmem:[#allocation2 + $0x128] sm:$0xf0]  ;;  %v1864_v16 = vadd.s32 4294967291, %v3100_v6 }
  0x3c   :  { %952 = vmatpush.bf16.msrb.mxu0 %v2101_v40  ;;  %980 = vmatpush.bf16.msrb.mxu2 %v2105_v42  ;;  %v2822_v11 = vld [vmem:[#allocation2 + $0x324] sm:$0xf0]  ;;  %v116_v17 = vrot.slane %v109_v8, 1  ;;  %v2818_v19 = vld [vmem:[#allocation2 + $0x30c] sm:$0xf]  ;;  %v3114_v24 = vadd.s32 4294967291, %v3109_v15  ;;  %v3121_v26 = vpack.c.bf16 %v109_v8, %v108_v7  ;;  %v2009_v29 = vor.u32 %v2754_v12, %v2006_v14 }
  0x3d   :  { %v2262_v20 = vld [vmem:[#allocation2 + $0x328] sm:$0xf0]  ;;  %v1972_v22 = vld [vmem:[#allocation2 + $0xc8] sm:$0xf]  ;;  %v3119_v25 = vsel %vm88_vm1, %v1864_v16, %v3100_v6  ;;  %v2261_v28 = vor.u32 %v2822_v11, %v2260_v5  ;;  %v2108_v14 = vld [vmem:[#allocation2 + $0x1d0] sm:$0xf] }
  0x3e   :  { %966 = vmatpush.bf16.msrb.mxu1 %v2357_v41  ;;  %994 = vmatpush.bf16.msrb.mxu3 %v2361_v46  ;;  %v2750_v23 = vld [vmem:[#allocation2 + $0xe4] sm:$0xf0]  ;;  %v117_v27 = vsel %vm114_vm0, %v115_v13, %v116_v17  ;;  %vm2914_vm3 = vcmp.ne.s32.totalorder %v3119_v25, 4  ;;  %v123_v32 = vsel %vm122_vm2, %v116_v17, %v120_v21  ;;  %v2265_v33 = vor.u32 %v2818_v19, %v2262_v20  ;;  %v2746_v34 = vld [vmem:[#allocation2 + $0xcc] sm:$0xf] }
  0x3f   :  { %v2228_v30 = vld [vmem:[#allocation2 + $0x2c8] sm:$0xf]  ;;  %v1974_v35 = vld [vmem:[#allocation2 + $0xe8] sm:$0xf0]  ;;  %vm2913_vm4 = vcmp.ne.s32.totalorder %v3114_v24, 4  ;;  %v3131_v39 = vpack.c.bf16 %v123_v32, %v117_v27  ;;  %v1973_v40 = vor.u32 %v2750_v23, %v1972_v22 }
  0x40   :  { %953 = vmatpush.bf16.msrb.mxu0 %v2069_v52  ;;  %981 = vmatpush.bf16.msrb.mxu2 %v2073_v57  ;;  %v2814_v31 = vld [vmem:[#allocation2 + $0x2e4] sm:$0xf0]  ;;  %v2810_v36 = vld [vmem:[#allocation2 + $0x2cc] sm:$0xf]  ;;  %vm3127_vm5 = vmpackc.low %vm2913_vm4, %vm2914_vm3  ;;  %v1977_v42 = vor.u32 %v2746_v34, %v1974_v35 }
  0x41   :  { %v2230_v37 = vld [vmem:[#allocation2 + $0x2e8] sm:$0xf0]  ;;  %2392 = vmatmul.msk.bf16.vlgmr.msra.gmra.mxu2 %vm3127_vm5, %v3121_v26  ;;  %v2229_v41 = vor.u32 %v2814_v31, %v2228_v30  ;;  %v1940_v43 = vld [vmem:[#allocation2 + $0x88] sm:$0xf]  ;;  %2382 = vmatmul.msk.bf16.vlgmr.msra.gmra.mxu0 %vm3127_vm5, %v3121_v26  ;;  %v2783_v16 = vld [vmem:[#allocation2 + $0x1ec] sm:$0xf0] }
  0x42   :  { %967 = vmatpush.bf16.msrb.mxu1 %v2325_v56  ;;  %995 = vmatpush.bf16.msrb.mxu3 %v2329_v61  ;;  %v2742_v44 = vld [vmem:[#allocation2 + $0xa4] sm:$0xf0]  ;;  %v2233_v46 = vor.u32 %v2810_v36, %v2230_v37  ;;  %v2738_v48 = vld [vmem:[#allocation2 + $0x8c] sm:$0xf]  ;;  %v2364_v17 = vld [vmem:[#allocation2 + $0x3d0] sm:$0xf]  ;;  %v2109_v30 = vor.u32 %v2783_v16, %v2108_v14 }
  0x43   :  { %v2196_v45 = vld [vmem:[#allocation2 + $0x288] sm:$0xf]  ;;  %v1942_v49 = vld [vmem:[#allocation2 + $0xa8] sm:$0xf0]  ;;  %2397 = vmatmul.msk.bf16.vlgmr.msra.gmra.mxu3 %vm3127_vm5, %v3131_v39  ;;  %2387 = vmatmul.msk.bf16.vlgmr.msra.gmra.mxu1 %vm3127_vm5, %v3131_v39  ;;  %v1941_v52 = vor.u32 %v2742_v44, %v1940_v43  ;;  %v2847_v19 = vld [vmem:[#allocation2 + $0x3ec] sm:$0xf0] }
  0x44   :  { %954 = vmatpush.bf16.msrb.mxu0 %v2037_v3  ;;  %982 = vmatpush.bf16.msrb.mxu2 %v2041_v9  ;;  %v2806_v47 = vld [vmem:[#allocation2 + $0x2a4] sm:$0xf0]  ;;  %v2802_v50 = vld [vmem:[#allocation2 + $0x28c] sm:$0xf]  ;;  %v1945_v54 = vor.u32 %v2738_v48, %v1942_v49  ;;  %v2779_v20 = vld [vmem:[#allocation2 + $0x1d4] sm:$0xf]  ;;  %v2365_v31 = vor.u32 %v2847_v19, %v2364_v17 }
  0x45   :  { %v2198_v51 = vld [vmem:[#allocation2 + $0x2a8] sm:$0xf0]  ;;  %v2197_v53 = vor.u32 %v2806_v47, %v2196_v45  ;;  %v1908_v56 = vld [vmem:[#allocation2 + $0x48] sm:$0xf]  ;;  %v2110_v21 = vld [vmem:[#allocation2 + $0x1f0] sm:$0xf0] }
  0x46   :  { %968 = vmatpush.bf16.msrb.mxu1 %v2293_v4  ;;  %996 = vmatpush.bf16.msrb.mxu3 %v2297_v10  ;;  %v2734_v57 = vld [vmem:[#allocation2 + $0x64] sm:$0xf0]  ;;  %v2201_v59 = vor.u32 %v2802_v50, %v2198_v51  ;;  %v2730_v61 = vld [vmem:[#allocation2 + $0x4c] sm:$0xf]  ;;  %v2843_v27 = vld [vmem:[#allocation2 + $0x3d4] sm:$0xf]  ;;  %v2113_v32 = vor.u32 %v2779_v20, %v2110_v21 }
  0x47   :  { %v2164_v58 = vld [vmem:[#allocation2 + $0x248] sm:$0xf]  ;;  %v1910_v62 = vld [vmem:[#allocation2 + $0x68] sm:$0xf0]  ;;  %v1909_v1 = vor.u32 %v2734_v57, %v1908_v56  ;;  %v2775_v34 = vld [vmem:[#allocation2 + $0x1ac] sm:$0xf0] }
  0x48   :  { %955 = vmatpush.bf16.msrb.mxu0 %v2005_v18  ;;  %983 = vmatpush.bf16.msrb.mxu2 %v2009_v29  ;;  %v2798_v60 = vld [vmem:[#allocation2 + $0x264] sm:$0xf0]  ;;  %v2794_v63 = vld [vmem:[#allocation2 + $0x24c] sm:$0xf]  ;;  %v1913_v5 = vor.u32 %v2730_v61, %v1910_v62  ;;  %v2332_v35 = vld [vmem:[#allocation2 + $0x390] sm:$0xf] }
  0x49   :  { %v2166_v0 = vld [vmem:[#allocation2 + $0x268] sm:$0xf0]  ;;  %v1876_v2 = vld [vmem:[#allocation2 + $0x8] sm:$0xf]  ;;  %v2165_v4 = vor.u32 %v2798_v60, %v2164_v58  ;;  %v2839_v37 = vld [vmem:[#allocation2 + $0x3ac] sm:$0xf0] }
  0x4a   :  { %969 = vmatpush.bf16.msrb.mxu1 %v2261_v28  ;;  %997 = vmatpush.bf16.msrb.mxu3 %v2265_v33  ;;  %v2726_v3 = vld [vmem:[#allocation2 + $0x24] sm:$0xf0]  ;;  %v2722_v9 = vld [vmem:[#allocation2 + $0xc] sm:$0xf]  ;;  %v2169_v10 = vor.u32 %v2794_v63, %v2166_v0  ;;  %v2366_v28 = vld [vmem:[#allocation2 + $0x3f0] sm:$0xf0]  ;;  %v2333_v45 = vor.u32 %v2839_v37, %v2332_v35 }
  0x4b   :  { %v2132_v7 = vld [vmem:[#allocation2 + $0x208] sm:$0xf]  ;;  %v1878_v11 = vld [vmem:[#allocation2 + $0x28] sm:$0xf0]  ;;  %v1877_v18 = vor.u32 %v2726_v3, %v1876_v2  ;;  %v2076_v33 = vld [vmem:[#allocation2 + $0x190] sm:$0xf]  ;;  %v2369_v36 = vor.u32 %v2843_v27, %v2366_v28 }
  0x4c   :  { %956 = vmatpush.bf16.msrb.mxu0 %v1973_v40  ;;  %984 = vmatpush.bf16.msrb.mxu2 %v1977_v42  ;;  %v2790_v8 = vld [vmem:[#allocation2 + $0x224] sm:$0xf0]  ;;  %v2786_v12 = vld [vmem:[#allocation2 + $0x20c] sm:$0xf]  ;;  %v1881_v23 = vor.u32 %v2722_v9, %v1878_v11  ;;  %v2771_v40 = vld [vmem:[#allocation2 + $0x194] sm:$0xf]  ;;  %v2077_v44 = vor.u32 %v2775_v34, %v2076_v33 }
  0x4d   :  { %v2134_v13 = vld [vmem:[#allocation2 + $0x228] sm:$0xf0]  ;;  %v2133_v22 = vor.u32 %v2790_v8, %v2132_v7  ;;  %v2835_v42 = vld [vmem:[#allocation2 + $0x394] sm:$0xf]  ;;  %v2044_v47 = vld [vmem:[#allocation2 + $0x150] sm:$0xf] }
  0x4e   :  { %970 = vmatpush.bf16.msrb.mxu1 %v2229_v41  ;;  %998 = vmatpush.bf16.msrb.mxu3 %v2233_v46  ;;  %v2137_v29 = vor.u32 %v2786_v12, %v2134_v13  ;;  %v2078_v41 = vld [vmem:[#allocation2 + $0x1b0] sm:$0xf0]  ;;  %v2767_v48 = vld [vmem:[#allocation2 + $0x16c] sm:$0xf0]  ;;  %v2860_v38 = vld [vmem:[#allocation6 + $0x54] sm:$0xf0] }
  0x4f   :  { %v2334_v43 = vld [vmem:[#allocation2 + $0x3b0] sm:$0xf0]  ;;  %v2081_v46 = vor.u32 %v2771_v40, %v2078_v41  ;;  %v2300_v49 = vld [vmem:[#allocation2 + $0x350] sm:$0xf]  ;;  %v2045_v57 = vor.u32 %v2767_v48, %v2044_v47 }
  0x50   :  { %957 = vmatpush.bf16.msrb.mxu0 %v1941_v52  ;;  %985 = vmatpush.bf16.msrb.mxu2 %v1945_v54  ;;  %v2337_v50 = vor.u32 %v2835_v42, %v2334_v43  ;;  %v2831_v51 = vld [vmem:[#allocation2 + $0x36c] sm:$0xf0]  ;;  %v2763_v52 = vld [vmem:[#allocation2 + $0x154] sm:$0xf] }
  0x51   :  { %v2827_v54 = vld [vmem:[#allocation2 + $0x354] sm:$0xf]  ;;  %v2301_v58 = vor.u32 %v2831_v51, %v2300_v49  ;;  %v2012_v60 = vld [vmem:[#allocation2 + $0x110] sm:$0xf] }
  0x52   :  { %971 = vmatpush.bf16.msrb.mxu1 %v2197_v53  ;;  %999 = vmatpush.bf16.msrb.mxu3 %v2201_v59  ;;  %v2046_v53 = vld [vmem:[#allocation2 + $0x170] sm:$0xf0]  ;;  %v2759_v61 = vld [vmem:[#allocation2 + $0x12c] sm:$0xf0] }
  0x53   :  { %v2302_v56 = vld [vmem:[#allocation2 + $0x370] sm:$0xf0]  ;;  %v2049_v59 = vor.u32 %v2763_v52, %v2046_v53  ;;  %v2268_v62 = vld [vmem:[#allocation2 + $0x310] sm:$0xf] }
  0x54   :  { %958 = vmatpush.bf16.msrb.mxu0 %v1909_v1  ;;  %986 = vmatpush.bf16.msrb.mxu2 %v1913_v5  ;;  %v2305_v63 = vor.u32 %v2827_v54, %v2302_v56  ;;  %v2823_v0 = vld [vmem:[#allocation2 + $0x32c] sm:$0xf0]  ;;  %v2755_v1 = vld [vmem:[#allocation2 + $0x114] sm:$0xf]  ;;  %v2013_v5 = vor.u32 %v2759_v61, %v2012_v60  ;;  %v2116_v61 = vld [vmem:[#allocation2 + $0x1d8] sm:$0xf] }
  0x55   :  { %v2014_v2 = vld [vmem:[#allocation2 + $0x130] sm:$0xf0]  ;;  %v2269_v7 = vor.u32 %v2823_v0, %v2268_v62  ;;  %v1980_v9 = vld [vmem:[#allocation2 + $0xd0] sm:$0xf]  ;;  %v2784_v62 = vld [vmem:[#allocation2 + $0x1f4] sm:$0xf0] }
  0x56   :  { %972 = vmatpush.bf16.msrb.mxu1 %v2165_v4  ;;  %1000 = vmatpush.bf16.msrb.mxu3 %v2169_v10  ;;  %v2819_v3 = vld [vmem:[#allocation2 + $0x314] sm:$0xf]  ;;  %v2017_v8 = vor.u32 %v2755_v1, %v2014_v2  ;;  %v2751_v10 = vld [vmem:[#allocation2 + $0xec] sm:$0xf0]  ;;  %v2848_v1 = vld [vmem:[#allocation2 + $0x3f4] sm:$0xf0] }
  0x57   :  { %v2270_v4 = vld [vmem:[#allocation2 + $0x330] sm:$0xf0]  ;;  %v2236_v11 = vld [vmem:[#allocation2 + $0x2d0] sm:$0xf]  ;;  %v1981_v19 = vor.u32 %v2751_v10, %v1980_v9  ;;  %v2780_v2 = vld [vmem:[#allocation2 + $0x1dc] sm:$0xf]  ;;  %v2117_v10 = vor.u32 %v2784_v62, %v2116_v61 }
  0x58   :  { %959 = vmatpush.bf16.msrb.mxu0 %v1877_v18  ;;  %987 = vmatpush.bf16.msrb.mxu2 %v1881_v23  ;;  %v2273_v12 = vor.u32 %v2819_v3, %v2270_v4  ;;  %v2815_v13 = vld [vmem:[#allocation2 + $0x2ec] sm:$0xf0]  ;;  %v2747_v14 = vld [vmem:[#allocation2 + $0xd4] sm:$0xf]  ;;  %v2118_v3 = vld [vmem:[#allocation2 + $0x1f8] sm:$0xf0] }
  0x59   :  { %v1982_v16 = vld [vmem:[#allocation2 + $0xf0] sm:$0xf0]  ;;  %v2237_v20 = vor.u32 %v2815_v13, %v2236_v11  ;;  %v2743_v23 = vld [vmem:[#allocation2 + $0xac] sm:$0xf0]  ;;  %v2084_v13 = vld [vmem:[#allocation2 + $0x198] sm:$0xf] }
  0x5a   :  { %973 = vmatpush.bf16.msrb.mxu1 %v2133_v22  ;;  %1001 = vmatpush.bf16.msrb.mxu3 %v2137_v29  ;;  %v2811_v17 = vld [vmem:[#allocation2 + $0x2d4] sm:$0xf]  ;;  %v1985_v21 = vor.u32 %v2747_v14, %v1982_v16  ;;  %v1948_v22 = vld [vmem:[#allocation2 + $0x90] sm:$0xf]  ;;  %v2776_v14 = vld [vmem:[#allocation2 + $0x1b4] sm:$0xf0] }
  0x5b   :  { %2402 = vmatmul.msk.bf16.vlgmr.msrb.gmra.mxu0 %vm3127_vm5, %v3121_v26  ;;  %2412 = vmatmul.msk.bf16.vlgmr.msrb.gmra.mxu2 %vm3127_vm5, %v3121_v26  ;;  %v2238_v18 = vld [vmem:[#allocation2 + $0x2f0] sm:$0xf0]  ;;  %v2204_v27 = vld [vmem:[#allocation2 + $0x290] sm:$0xf]  ;;  %v1949_v34 = vor.u32 %v2743_v23, %v1948_v22  ;;  %v2340_v16 = vld [vmem:[#allocation2 + $0x398] sm:$0xf]  ;;  %v2085_v23 = vor.u32 %v2776_v14, %v2084_v13 }
  0x5c   :  { %1008 = vmatpush.bf16.msra.mxu0 %v2109_v30  ;;  %1036 = vmatpush.bf16.msra.mxu2 %v2113_v32  ;;  %v2241_v28 = vor.u32 %v2811_v17, %v2238_v18  ;;  %v2807_v29 = vld [vmem:[#allocation2 + $0x2ac] sm:$0xf0]  ;;  %v2739_v30 = vld [vmem:[#allocation2 + $0x94] sm:$0xf]  ;;  %v2840_v18 = vld [vmem:[#allocation2 + $0x3b4] sm:$0xf0] }
  0x5d   :  { %2407 = vmatmul.msk.bf16.vlgmr.msrb.gmra.mxu1 %vm3127_vm5, %v3131_v39  ;;  %2417 = vmatmul.msk.bf16.vlgmr.msrb.gmra.mxu3 %vm3127_vm5, %v3131_v39  ;;  %v2803_v32 = vld [vmem:[#allocation2 + $0x294] sm:$0xf]  ;;  %v2205_v35 = vor.u32 %v2807_v29, %v2204_v27  ;;  %v1916_v37 = vld [vmem:[#allocation2 + $0x50] sm:$0xf]  ;;  %v2342_v22 = vld [vmem:[#allocation2 + $0x3b8] sm:$0xf0]  ;;  %v2341_v27 = vor.u32 %v2840_v18, %v2340_v16 }
  0x5e   :  { %1022 = vmatpush.bf16.msra.mxu1 %v2365_v31  ;;  %1050 = vmatpush.bf16.msra.mxu3 %v2369_v36  ;;  %v1950_v31 = vld [vmem:[#allocation2 + $0xb0] sm:$0xf0]  ;;  %v2735_v40 = vld [vmem:[#allocation2 + $0x6c] sm:$0xf0]  ;;  %v2052_v29 = vld [vmem:[#allocation2 + $0x158] sm:$0xf] }
  0x5f   :  { %v2206_v33 = vld [vmem:[#allocation2 + $0x2b0] sm:$0xf0]  ;;  %v1953_v36 = vor.u32 %v2739_v30, %v1950_v31  ;;  %v2172_v41 = vld [vmem:[#allocation2 + $0x250] sm:$0xf]  ;;  %v1917_v48 = vor.u32 %v2735_v40, %v1916_v37  ;;  %v2768_v30 = vld [vmem:[#allocation2 + $0x174] sm:$0xf0] }
  0x60   :  { %1009 = vmatpush.bf16.msra.mxu0 %v2077_v44  ;;  %1037 = vmatpush.bf16.msra.mxu2 %v2081_v46  ;;  %v2209_v42 = vor.u32 %v2803_v32, %v2206_v33  ;;  %v2799_v43 = vld [vmem:[#allocation2 + $0x26c] sm:$0xf0]  ;;  %v2731_v44 = vld [vmem:[#allocation2 + $0x54] sm:$0xf]  ;;  %v2308_v31 = vld [vmem:[#allocation2 + $0x358] sm:$0xf]  ;;  %v2053_v40 = vor.u32 %v2768_v30, %v2052_v29 }
  0x61   :  { %v2795_v46 = vld [vmem:[#allocation2 + $0x254] sm:$0xf]  ;;  %v1884_v49 = vld [vmem:[#allocation2 + $0x10] sm:$0xf]  ;;  %v2173_v51 = vor.u32 %v2799_v43, %v2172_v41  ;;  %v2832_v33 = vld [vmem:[#allocation2 + $0x374] sm:$0xf0] }
  0x62   :  { %1023 = vmatpush.bf16.msra.mxu1 %v2333_v45  ;;  %1051 = vmatpush.bf16.msra.mxu3 %v2337_v50  ;;  %v1918_v45 = vld [vmem:[#allocation2 + $0x70] sm:$0xf0]  ;;  %v2727_v50 = vld [vmem:[#allocation2 + $0x2c] sm:$0xf0]  ;;  %v2310_v37 = vld [vmem:[#allocation2 + $0x378] sm:$0xf0]  ;;  %v2309_v41 = vor.u32 %v2832_v33, %v2308_v31 }
  0x63   :  { %v2174_v47 = vld [vmem:[#allocation2 + $0x270] sm:$0xf0]  ;;  %v1921_v52 = vor.u32 %v2731_v44, %v1918_v45  ;;  %v2140_v53 = vld [vmem:[#allocation2 + $0x210] sm:$0xf]  ;;  %v1885_v0 = vor.u32 %v2727_v50, %v1884_v49  ;;  %v2020_v43 = vld [vmem:[#allocation2 + $0x118] sm:$0xf] }
  0x64   :  { %1010 = vmatpush.bf16.msra.mxu0 %v2045_v57  ;;  %1038 = vmatpush.bf16.msra.mxu2 %v2049_v59  ;;  %v2791_v54 = vld [vmem:[#allocation2 + $0x22c] sm:$0xf0]  ;;  %v2723_v56 = vld [vmem:[#allocation2 + $0x14] sm:$0xf]  ;;  %v2177_v57 = vor.u32 %v2795_v46, %v2174_v47  ;;  %v2760_v44 = vld [vmem:[#allocation2 + $0x134] sm:$0xf0] }
  0x65   :  { %v2787_v59 = vld [vmem:[#allocation2 + $0x214] sm:$0xf]  ;;  %v2141_v4 = vor.u32 %v2791_v54, %v2140_v53  ;;  %v2276_v45 = vld [vmem:[#allocation2 + $0x318] sm:$0xf]  ;;  %v2022_v49 = vld [vmem:[#allocation2 + $0x138] sm:$0xf0] }
  0x66   :  { %1024 = vmatpush.bf16.msra.mxu1 %v2301_v58  ;;  %1052 = vmatpush.bf16.msra.mxu3 %v2305_v63  ;;  %v1886_v58 = vld [vmem:[#allocation2 + $0x30] sm:$0xf0]  ;;  %v2372_v63 = vld [vmem:[#allocation2 + $0x3d8] sm:$0xf]  ;;  %v2820_v50 = vld [vmem:[#allocation2 + $0x31c] sm:$0xf] }
  0x67   :  { %v2142_v60 = vld [vmem:[#allocation2 + $0x230] sm:$0xf0]  ;;  %v2373_v11 = vor.u32 %v2848_v1, %v2372_v63  ;;  %v2824_v47 = vld [vmem:[#allocation2 + $0x334] sm:$0xf0]  ;;  %v2748_v61 = vld [vmem:[#allocation2 + $0xdc] sm:$0xf] }
  0x68   :  { %1011 = vmatpush.bf16.msra.mxu0 %v2013_v5  ;;  %1039 = vmatpush.bf16.msra.mxu2 %v2017_v8  ;;  %v1889_v5 = vor.u32 %v2723_v56, %v1886_v58  ;;  %v2374_v8 = vld [vmem:[#allocation2 + $0x3f8] sm:$0xf0]  ;;  %v2145_v9 = vor.u32 %v2787_v59, %v2142_v60  ;;  %v2277_v53 = vor.u32 %v2824_v47, %v2276_v45  ;;  %v1988_v56 = vld [vmem:[#allocation2 + $0xd8] sm:$0xf] }
  0x69   :  { %v2244_v58 = vld [vmem:[#allocation2 + $0x2d8] sm:$0xf]  ;;  %v1990_v62 = vld [vmem:[#allocation2 + $0xf8] sm:$0xf0] }
  0x6a   :  { %1025 = vmatpush.bf16.msra.mxu1 %v2269_v7  ;;  %1053 = vmatpush.bf16.msra.mxu3 %v2273_v12  ;;  %v2844_v7 = vld [vmem:[#allocation2 + $0x3dc] sm:$0xf]  ;;  %v2121_v12 = vor.u32 %v2780_v2, %v2118_v3  ;;  %v2816_v60 = vld [vmem:[#allocation2 + $0x2f4] sm:$0xf0]  ;;  %v1993_v3 = vor.u32 %v2748_v61, %v1990_v62  ;;  %v2572_v62 = vld [vmem:[#allocation6 + $0xe0] sm:$0xf] }
  0x6b   :  { %v2377_v17 = vor.u32 %v2844_v7, %v2374_v8  ;;  %v2812_v63 = vld [vmem:[#allocation2 + $0x2dc] sm:$0xf]  ;;  %v2245_v2 = vor.u32 %v2816_v60, %v2244_v58  ;;  %v2212_v7 = vld [vmem:[#allocation2 + $0x298] sm:$0xf]  ;;  %v2500_v60 = vld [vmem:[#allocation6 + $0x50] sm:$0xf] }
  0x6c   :  { %1012 = vmatpush.bf16.msra.mxu0 %v1981_v19  ;;  %1040 = vmatpush.bf16.msra.mxu2 %v1985_v21  ;;  %v2772_v19 = vld [vmem:[#allocation2 + $0x19c] sm:$0xf]  ;;  %v1924_v18 = vld [vmem:[#allocation2 + $0x58] sm:$0xf]  ;;  %v2501_v61 = vor.u32 %v2860_v38, %v2500_v60  ;;  %v2510_v38 = vld [vmem:[#allocation6 + $0x68] sm:$0xf0] }
  0x6d   :  { %v2836_v21 = vld [vmem:[#allocation2 + $0x39c] sm:$0xf]  ;;  %v1892_v33 = vld [vmem:[#allocation2 + $0x18] sm:$0xf] }
  0x6e   :  { %1026 = vmatpush.bf16.msra.mxu1 %v2237_v20  ;;  %1054 = vmatpush.bf16.msra.mxu3 %v2241_v28  ;;  %v2086_v20 = vld [vmem:[#allocation2 + $0x1b8] sm:$0xf0]  ;;  %v2345_v32 = vor.u32 %v2836_v21, %v2342_v22  ;;  %v2800_v22 = vld [vmem:[#allocation2 + $0x274] sm:$0xf0] }
  0x6f   :  { %v2089_v28 = vor.u32 %v2772_v19, %v2086_v20  ;;  %v2214_v13 = vld [vmem:[#allocation2 + $0x2b8] sm:$0xf0]  ;;  %v2736_v19 = vld [vmem:[#allocation2 + $0x74] sm:$0xf0] }
  0x70   :  { %1013 = vmatpush.bf16.msra.mxu0 %v1949_v34  ;;  %1041 = vmatpush.bf16.msra.mxu2 %v1953_v36  ;;  %v2764_v34 = vld [vmem:[#allocation2 + $0x15c] sm:$0xf]  ;;  %v2180_v20 = vld [vmem:[#allocation2 + $0x258] sm:$0xf]  ;;  %v1925_v30 = vor.u32 %v2736_v19, %v1924_v18 }
  0x71   :  { %v2828_v36 = vld [vmem:[#allocation2 + $0x35c] sm:$0xf]  ;;  %v2181_v31 = vor.u32 %v2800_v22, %v2180_v20  ;;  %v2880_v58 = vld [vmem:[#allocation6 + $0xf4] sm:$0xf0]  ;;  %v2854_v22 = vld [vmem:[#allocation6 + $0x24] sm:$0xf0] }
  0x72   :  { %1027 = vmatpush.bf16.msra.mxu1 %v2205_v35  ;;  %1055 = vmatpush.bf16.msra.mxu3 %v2209_v42  ;;  %v2054_v35 = vld [vmem:[#allocation2 + $0x178] sm:$0xf0]  ;;  %v2313_v46 = vor.u32 %v2828_v36, %v2310_v37  ;;  %v2792_v37 = vld [vmem:[#allocation2 + $0x234] sm:$0xf0] }
  0x73   :  { %v2057_v42 = vor.u32 %v2764_v34, %v2054_v35  ;;  %v2182_v29 = vld [vmem:[#allocation2 + $0x278] sm:$0xf0]  ;;  %v2728_v34 = vld [vmem:[#allocation2 + $0x34] sm:$0xf0] }
  0x74   :  { %1014 = vmatpush.bf16.msra.mxu0 %v1917_v48  ;;  %1042 = vmatpush.bf16.msra.mxu2 %v1921_v52  ;;  %v2756_v48 = vld [vmem:[#allocation2 + $0x11c] sm:$0xf]  ;;  %v2021_v52 = vor.u32 %v2760_v44, %v2020_v43  ;;  %v2148_v35 = vld [vmem:[#allocation2 + $0x218] sm:$0xf]  ;;  %v1893_v44 = vor.u32 %v2728_v34, %v1892_v33  ;;  %v2540_v34 = vld [vmem:[#allocation6 + $0xa0] sm:$0xf] }
  0x75   :  { %v2025_v54 = vor.u32 %v2756_v48, %v2022_v49  ;;  %v2150_v43 = vld [vmem:[#allocation2 + $0x238] sm:$0xf0]  ;;  %v2149_v45 = vor.u32 %v2792_v37, %v2148_v35  ;;  %v2516_v48 = vld [vmem:[#allocation6 + $0x70] sm:$0xf]  ;;  %v2864_v49 = vld [vmem:[#allocation6 + $0x74] sm:$0xf0] }
  0x76   :  { %1028 = vmatpush.bf16.msra.mxu1 %v2173_v51  ;;  %1056 = vmatpush.bf16.msra.mxu3 %v2177_v57  ;;  %v2278_v51 = vld [vmem:[#allocation2 + $0x338] sm:$0xf0]  ;;  %v2752_v57 = vld [vmem:[#allocation2 + $0xf4] sm:$0xf0]  ;;  %v2870_v35 = vld [vmem:[#allocation6 + $0xa4] sm:$0xf0] }
  0x77   :  { %v2281_v59 = vor.u32 %v2820_v50, %v2278_v51  ;;  %v1989_v1 = vor.u32 %v2752_v57, %v1988_v56  ;;  %v2517_v50 = vor.u32 %v2864_v49, %v2516_v48  ;;  %v2508_v51 = vld [vmem:[#allocation6 + $0x60] sm:$0xf]  ;;  %v2580_v57 = vld [vmem:[#allocation6 + $0xf0] sm:$0xf]  ;;  %v2541_v37 = vor.u32 %v2870_v35, %v2540_v34  ;;  %v2518_v49 = vld [vmem:[#allocation6 + $0x78] sm:$0xf0] }
  0x78   :  { %1015 = vmatpush.bf16.msra.mxu0 %v1885_v0  ;;  %1043 = vmatpush.bf16.msra.mxu2 %v1889_v5  ;;  %v2246_v0 = vld [vmem:[#allocation2 + $0x2f8] sm:$0xf0]  ;;  %v2744_v5 = vld [vmem:[#allocation2 + $0xb4] sm:$0xf0]  ;;  %v2574_v34 = vld [vmem:[#allocation6 + $0xe8] sm:$0xf0] }
  0x79   :  { %v2249_v8 = vor.u32 %v2812_v63, %v2246_v0  ;;  %v2878_v63 = vld [vmem:[#allocation6 + $0xe4] sm:$0xf0] }
  0x7a   :  { %1029 = vmatpush.bf16.msra.mxu1 %v2141_v4  ;;  %1057 = vmatpush.bf16.msra.mxu3 %v2145_v9  ;;  %v1956_v4 = vld [vmem:[#allocation2 + $0x98] sm:$0xf] }
  0x7b   :  { %2422 = vmatmul.msk.bf16.vlgmr.msra.gmra.mxu0 %vm3127_vm5, %v3121_v26  ;;  %2432 = vmatmul.msk.bf16.vlgmr.msra.gmra.mxu2 %vm3127_vm5, %v3121_v26  ;;  %v2808_v9 = vld [vmem:[#allocation2 + $0x2b4] sm:$0xf0]  ;;  %v1957_v14 = vor.u32 %v2744_v5, %v1956_v4  ;;  %v2858_v4 = vld [vmem:[#allocation6 + $0x44] sm:$0xf0] }
  0x7c   :  { %1064 = vmatpush.bf16.msrb.mxu0 %v2117_v10  ;;  %1092 = vmatpush.bf16.msrb.mxu2 %v2121_v12  ;;  %v2740_v10 = vld [vmem:[#allocation2 + $0x9c] sm:$0xf]  ;;  %v2213_v16 = vor.u32 %v2808_v9, %v2212_v7  ;;  %v2564_v7 = vld [vmem:[#allocation6 + $0xd0] sm:$0xf] }
  0x7d   :  { %2427 = vmatmul.msk.bf16.vlgmr.msra.gmra.mxu1 %vm3127_vm5, %v3131_v39  ;;  %2437 = vmatmul.msk.bf16.vlgmr.msra.gmra.mxu3 %vm3127_vm5, %v3131_v39  ;;  %v2804_v12 = vld [vmem:[#allocation2 + $0x29c] sm:$0xf] }
  0x7e   :  { %1078 = vmatpush.bf16.msrb.mxu1 %v2373_v11  ;;  %1106 = vmatpush.bf16.msrb.mxu3 %v2377_v17  ;;  %v1958_v11 = vld [vmem:[#allocation2 + $0xb8] sm:$0xf0]  ;;  %v2217_v21 = vor.u32 %v2804_v12, %v2214_v13 }
  0x7f   :  { %v1961_v17 = vor.u32 %v2740_v10, %v1958_v11  ;;  %v2484_v10 = vld [vmem:[#allocation6 + $0x30] sm:$0xf]  ;;  %v2856_v11 = vld [vmem:[#allocation6 + $0x34] sm:$0xf0] }
  0x80   :  { %1065 = vmatpush.bf16.msrb.mxu0 %v2085_v23  ;;  %1093 = vmatpush.bf16.msrb.mxu2 %v2089_v28  ;;  %v2732_v23 = vld [vmem:[#allocation2 + $0x5c] sm:$0xf]  ;;  %v2485_v12 = vor.u32 %v2856_v11, %v2484_v10 }
  0x81   :  { %v2796_v28 = vld [vmem:[#allocation2 + $0x25c] sm:$0xf] }
  0x82   :  { %1079 = vmatpush.bf16.msrb.mxu1 %v2341_v27  ;;  %1107 = vmatpush.bf16.msrb.mxu3 %v2345_v32  ;;  %v1926_v27 = vld [vmem:[#allocation2 + $0x78] sm:$0xf0]  ;;  %v2185_v36 = vor.u32 %v2796_v28, %v2182_v29  ;;  %v2872_v28 = vld [vmem:[#allocation6 + $0xb4] sm:$0xf0] }
  0x83   :  { %v1929_v32 = vor.u32 %v2732_v23, %v1926_v27  ;;  %v2548_v27 = vld [vmem:[#allocation6 + $0xb0] sm:$0xf] }
  0x84   :  { %1066 = vmatpush.bf16.msrb.mxu0 %v2053_v40  ;;  %1094 = vmatpush.bf16.msrb.mxu2 %v2057_v42  ;;  %v2724_v40 = vld [vmem:[#allocation2 + $0x1c] sm:$0xf]  ;;  %v2549_v29 = vor.u32 %v2872_v28, %v2548_v27  ;;  %v2700_v28 = vld [vmem:[#allocation6 + $0x1e0] sm:$0xf] }
  0x85   :  { %v2788_v42 = vld [vmem:[#allocation2 + $0x21c] sm:$0xf] }
  0x86   :  { %1080 = vmatpush.bf16.msrb.mxu1 %v2309_v41  ;;  %1108 = vmatpush.bf16.msrb.mxu3 %v2313_v46  ;;  %v1894_v41 = vld [vmem:[#allocation2 + $0x38] sm:$0xf0]  ;;  %v2153_v47 = vor.u32 %v2788_v42, %v2150_v43 }
  0x87   :  { %v1897_v46 = vor.u32 %v2724_v40, %v1894_v41  ;;  %v2460_v40 = vld [vmem:[#allocation6] sm:$0xf]  ;;  %v2850_v41 = vld [vmem:[#allocation6 + $0x4] sm:$0xf0] }
  0x88   :  { %1067 = vmatpush.bf16.msrb.mxu0 %v2021_v52  ;;  %1095 = vmatpush.bf16.msrb.mxu2 %v2025_v54  ;;  %v2862_v52 = vld [vmem:[#allocation6 + $0x64] sm:$0xf0]  ;;  %v2461_v43 = vor.u32 %v2850_v41, %v2460_v40  ;;  %v2620_v40 = vld [vmem:[#allocation6 + $0x140] sm:$0xf] }
  0x89   :  { %v2890_v41 = vld [vmem:[#allocation6 + $0x144] sm:$0xf0] }
  0x8a   :  { %1081 = vmatpush.bf16.msrb.mxu1 %v2277_v53  ;;  %1109 = vmatpush.bf16.msrb.mxu3 %v2281_v59  ;;  %v2509_v53 = vor.u32 %v2862_v52, %v2508_v51  ;;  %v2581_v59 = vor.u32 %v2880_v58, %v2580_v57  ;;  %v2868_v51 = vld [vmem:[#allocation6 + $0x94] sm:$0xf0]  ;;  %v2636_v57 = vld [vmem:[#allocation6 + $0x160] sm:$0xf]  ;;  %v2894_v58 = vld [vmem:[#allocation6 + $0x164] sm:$0xf0] }
  0x8b   :  { %v2637_v60 = vor.u32 %v2894_v58, %v2636_v57  ;;  %v2612_v58 = vld [vmem:[#allocation6 + $0x130] sm:$0xf] }
  0x8c   :  { %1068 = vmatpush.bf16.msrb.mxu0 %v1989_v1  ;;  %1096 = vmatpush.bf16.msrb.mxu2 %v1993_v3  ;;  %v2573_v1 = vor.u32 %v2878_v63, %v2572_v62  ;;  %v2492_v3 = vld [vmem:[#allocation6 + $0x40] sm:$0xf]  ;;  %v2866_v62 = vld [vmem:[#allocation6 + $0x84] sm:$0xf0] }
  0x8d   :  { %v2493_v5 = vor.u32 %v2858_v4, %v2492_v3  ;;  %v2708_v3 = vld [vmem:[#allocation6 + $0x1f0] sm:$0xf]  ;;  %v2912_v4 = vld [vmem:[#allocation6 + $0x1f4] sm:$0xf0] }
  0x8e   :  { %1082 = vmatpush.bf16.msrb.mxu1 %v2245_v2  ;;  %1110 = vmatpush.bf16.msrb.mxu3 %v2249_v8  ;;  %v2876_v8 = vld [vmem:[#allocation6 + $0xd4] sm:$0xf0] }
  0x8f   :  { %v2565_v9 = vor.u32 %v2876_v8, %v2564_v7  ;;  %v2709_v8 = vor.u32 %v2912_v4, %v2708_v3 }
  0x90   :  { %1069 = vmatpush.bf16.msrb.mxu0 %v1957_v14  ;;  %1097 = vmatpush.bf16.msrb.mxu2 %v1961_v17  ;;  %v2556_v14 = vld [vmem:[#allocation6 + $0xc0] sm:$0xf] }
  0x92   :  { %1083 = vmatpush.bf16.msrb.mxu1 %v2213_v16  ;;  %1111 = vmatpush.bf16.msrb.mxu3 %v2217_v21  ;;  %v2874_v16 = vld [vmem:[#allocation6 + $0xc4] sm:$0xf0]  ;;  %v2476_v21 = vld [vmem:[#allocation6 + $0x20] sm:$0xf] }
  0x93   :  { %v2557_v19 = vor.u32 %v2874_v16, %v2556_v14  ;;  %v2477_v23 = vor.u32 %v2854_v22, %v2476_v21  ;;  %v2892_v14 = vld [vmem:[#allocation6 + $0x154] sm:$0xf0]  ;;  %v2859_v16 = vld [vmem:[#allocation6 + $0x54] sm:$0xf]  ;;  %v2502_v21 = vld [vmem:[#allocation6 + $0x58] sm:$0xf0] }
  0x94   :  { %1070 = vmatpush.bf16.msrb.mxu0 %v1925_v30  ;;  %1098 = vmatpush.bf16.msrb.mxu2 %v1929_v32  ;;  %v2468_v30 = vld [vmem:[#allocation6 + $0x10] sm:$0xf]  ;;  %v2505_v27 = vor.u32 %v2859_v16, %v2502_v21  ;;  %v2604_v21 = vld [vmem:[#allocation6 + $0x120] sm:$0xf] }
  0x96   :  { %1084 = vmatpush.bf16.msrb.mxu1 %v2181_v31  ;;  %1112 = vmatpush.bf16.msrb.mxu3 %v2185_v36  ;;  %v2852_v31 = vld [vmem:[#allocation6 + $0x14] sm:$0xf0] }
  0x97   :  { %v2469_v32 = vor.u32 %v2852_v31, %v2468_v30  ;;  %v2877_v30 = vld [vmem:[#allocation6 + $0xe4] sm:$0xf] }
  0x98   :  { %1071 = vmatpush.bf16.msrb.mxu0 %v1893_v44  ;;  %1099 = vmatpush.bf16.msrb.mxu2 %v1897_v46  ;;  %v2644_v44 = vld [vmem:[#allocation6 + $0x170] sm:$0xf]  ;;  %v2863_v46 = vld [vmem:[#allocation6 + $0x74] sm:$0xf] }
  0x99   :  { %v2521_v52 = vor.u32 %v2863_v46, %v2518_v49  ;;  %v2908_v49 = vld [vmem:[#allocation6 + $0x1d4] sm:$0xf0] }
  0x9a   :  { %1085 = vmatpush.bf16.msrb.mxu1 %v2149_v45  ;;  %1113 = vmatpush.bf16.msrb.mxu3 %v2153_v47  ;;  %v2896_v45 = vld [vmem:[#allocation6 + $0x174] sm:$0xf0] }
  0x9b   :  { %2442 = vmatmul.msk.bf16.vlgmr.msrb.gmra.mxu0 %vm3127_vm5, %v3121_v26  ;;  %2452 = vmatmul.msk.bf16.vlgmr.msrb.gmra.mxu2 %vm3127_vm5, %v3121_v26  ;;  %v2645_v48 = vor.u32 %v2896_v45, %v2644_v44  ;;  %v2621_v44 = vor.u32 %v2890_v41, %v2620_v40  ;;  %v2494_v45 = vld [vmem:[#allocation6 + $0x48] sm:$0xf0]  ;;  %v2676_v40 = vld [vmem:[#allocation6 + $0x1b0] sm:$0xf]  ;;  %v2904_v41 = vld [vmem:[#allocation6 + $0x1b4] sm:$0xf0] }
  0x9c   :  { %1628 = vmatpush.bf16.msra.mxu0 %v2517_v50  ;;  %v2532_v50 = vld [vmem:[#allocation6 + $0x90] sm:$0xf] }
  0x9d   :  { %2447 = vmatmul.msk.bf16.vlgmr.msrb.gmra.mxu1 %vm3127_vm5, %v3131_v39  ;;  %2457 = vmatmul.msk.bf16.vlgmr.msrb.gmra.mxu3 %vm3127_vm5, %v3131_v39 }
  0x9e   :  { %1642 = vmatpush.bf16.msra.mxu1 %v2581_v59  ;;  %v2861_v59 = vld [vmem:[#allocation6 + $0x64] sm:$0xf]  ;;  %1656 = vmatpush.bf16.msra.mxu2 %v2645_v48  ;;  %v2692_v48 = vld [vmem:[#allocation6 + $0x1d0] sm:$0xf] }
  0x9f   :  { %v2513_v63 = vor.u32 %v2861_v59, %v2510_v38  ;;  %1670 = vmatpush.bf16.msra.mxu3 %v2709_v8  ;;  %v2888_v59 = vld [vmem:[#allocation6 + $0x134] sm:$0xf0] }
  0xa0   :  { %1629 = vmatpush.bf16.msra.mxu0 %v2509_v53  ;;  %v2533_v53 = vor.u32 %v2868_v51, %v2532_v50  ;;  %v2875_v50 = vld [vmem:[#allocation6 + $0xd4] sm:$0xf]  ;;  %v2693_v51 = vor.u32 %v2908_v49, %v2692_v48 }
  0xa2   :  { %1643 = vmatpush.bf16.msra.mxu1 %v2573_v1  ;;  %1657 = vmatpush.bf16.msra.mxu2 %v2637_v60  ;;  %v2855_v60 = vld [vmem:[#allocation6 + $0x34] sm:$0xf] }
  0xa4   :  { %1630 = vmatpush.bf16.msra.mxu0 %v2501_v61  ;;  %v2524_v61 = vld [vmem:[#allocation6 + $0x80] sm:$0xf] }
  0xa5   :  { %v2525_v1 = vor.u32 %v2866_v62, %v2524_v61  ;;  %v2613_v62 = vor.u32 %v2888_v59, %v2612_v58  ;;  %v2470_v58 = vld [vmem:[#allocation6 + $0x18] sm:$0xf0]  ;;  %v2668_v59 = vld [vmem:[#allocation6 + $0x1a0] sm:$0xf] }
  0xa6   :  { %1644 = vmatpush.bf16.msra.mxu1 %v2565_v9  ;;  %v2582_v9 = vld [vmem:[#allocation6 + $0xf8] sm:$0xf0] }
  0xa8   :  { %1631 = vmatpush.bf16.msra.mxu0 %v2493_v5  ;;  %v2879_v5 = vld [vmem:[#allocation6 + $0xf4] sm:$0xf] }
  0xa9   :  { %v2585_v11 = vor.u32 %v2879_v5, %v2582_v9  ;;  %v2684_v5 = vld [vmem:[#allocation6 + $0x1c0] sm:$0xf] }
  0xaa   :  { %1645 = vmatpush.bf16.msra.mxu1 %v2557_v19 }
  0xac   :  { %1632 = vmatpush.bf16.msra.mxu0 %v2485_v12  ;;  %v2628_v12 = vld [vmem:[#allocation6 + $0x150] sm:$0xf] }
  0xad   :  { %v2629_v19 = vor.u32 %v2892_v14, %v2628_v12  ;;  %v2906_v12 = vld [vmem:[#allocation6 + $0x1c4] sm:$0xf0]  ;;  %v2873_v14 = vld [vmem:[#allocation6 + $0xc4] sm:$0xf] }
  0xae   :  { %1646 = vmatpush.bf16.msra.mxu1 %v2549_v29  ;;  %v2910_v29 = vld [vmem:[#allocation6 + $0x1e4] sm:$0xf0]  ;;  %v2685_v16 = vor.u32 %v2906_v12, %v2684_v5  ;;  %v2588_v5 = vld [vmem:[#allocation6 + $0x100] sm:$0xf] }
  0xaf   :  { %1658 = vmatpush.bf16.msra.mxu2 %v2629_v19 }
  0xb0   :  { %1633 = vmatpush.bf16.msra.mxu0 %v2477_v23 }
  0xb2   :  { %1647 = vmatpush.bf16.msra.mxu1 %v2541_v37  ;;  %v2577_v37 = vor.u32 %v2877_v30, %v2574_v34 }
  0xb3   :  { %1659 = vmatpush.bf16.msra.mxu2 %v2621_v44 }
  0xb4   :  { %1634 = vmatpush.bf16.msra.mxu0 %v2469_v32  ;;  %v2701_v32 = vor.u32 %v2910_v29, %v2700_v28  ;;  %v2478_v28 = vld [vmem:[#allocation6 + $0x28] sm:$0xf0] }
  0xb6   :  { %1648 = vmatpush.bf16.msra.mxu1 %v2533_v53  ;;  %1671 = vmatpush.bf16.msra.mxu3 %v2701_v32 }
  0xb7   :  { %1660 = vmatpush.bf16.msra.mxu2 %v2613_v62 }
  0xb8   :  { %1635 = vmatpush.bf16.msra.mxu0 %v2461_v43  ;;  %v2857_v43 = vld [vmem:[#allocation6 + $0x44] sm:$0xf] }
  0xb9   :  { %v2497_v46 = vor.u32 %v2857_v43, %v2494_v45  ;;  %v2871_v45 = vld [vmem:[#allocation6 + $0xb4] sm:$0xf] }
  0xba   :  { %1649 = vmatpush.bf16.msra.mxu1 %v2525_v1  ;;  %1672 = vmatpush.bf16.msra.mxu3 %v2693_v51 }
  0xbc   :  { %1684 = vmatpush.bf16.msrb.mxu0 %v2521_v52  ;;  %v2566_v52 = vld [vmem:[#allocation6 + $0xd8] sm:$0xf0] }
  0xbd   :  { %v2569_v57 = vor.u32 %v2875_v50, %v2566_v52  ;;  %v2677_v50 = vor.u32 %v2904_v41, %v2676_v40  ;;  %v2893_v40 = vld [vmem:[#allocation6 + $0x164] sm:$0xf]  ;;  %v2638_v41 = vld [vmem:[#allocation6 + $0x168] sm:$0xf0] }
  0xbe   :  { %v3181_v54 = vpop.f32.mrf.mxu0  ;;  %1698 = vmatpush.bf16.msrb.mxu1 %v2585_v11  ;;  %1673 = vmatpush.bf16.msra.mxu3 %v2685_v16  ;;  %v2895_v16 = vld [vmem:[#allocation6 + $0x174] sm:$0xf] }
  0xc0   :  { %v3183_v56 = vpop.f32.mrf.mxu1  ;;  %1685 = vmatpush.bf16.msrb.mxu0 %v2513_v63  ;;  %v2486_v63 = vld [vmem:[#allocation6 + $0x38] sm:$0xf0] }
  0xc1   :  { %v920_v22 = vadd.f32 %v3183_v56, %v3181_v54  ;;  %v2489_v11 = vor.u32 %v2855_v60, %v2486_v63  ;;  %v2902_v60 = vld [vmem:[#allocation6 + $0x1a4] sm:$0xf0] }
  0xc2   :  { %1699 = vmatpush.bf16.msrb.mxu1 %v2577_v37  ;;  %1674 = vmatpush.bf16.msra.mxu3 %v2677_v50  ;;  %v2669_v63 = vor.u32 %v2902_v60, %v2668_v59  ;;  %v2526_v50 = vld [vmem:[#allocation6 + $0x88] sm:$0xf0] }
  0xc3   :  { %v1120_v54 = vmul.f32 %v920_v22, %v920_v22  ;;  %v2886_v22 = vld [vmem:[#allocation6 + $0x124] sm:$0xf0] }
  0xc4   :  { %v3185_v26 = vpop.f32.mrf.mxu2  ;;  %1686 = vmatpush.bf16.msrb.mxu0 %v2505_v27  ;;  %v2605_v27 = vor.u32 %v2886_v22, %v2604_v21 }
  0xc6   :  { %v3187_v39 = vpop.f32.mrf.mxu3  ;;  %v3189_v0 = vpop.f32.mrf.mxu0  ;;  %1700 = vmatpush.bf16.msrb.mxu1 %v2569_v57  ;;  %1661 = vmatpush.bf16.msra.mxu2 %v2605_v27 }
  0xc7   :  { %v948_v38 = vadd.f32 %v3187_v39, %v3185_v26  ;;  %v2558_v26 = vld [vmem:[#allocation6 + $0xc8] sm:$0xf0]  ;;  %1675 = vmatpush.bf16.msra.mxu3 %v2669_v63  ;;  %v2630_v63 = vld [vmem:[#allocation6 + $0x158] sm:$0xf0] }
  0xc8   :  { %v3191_v2 = vpop.f32.mrf.mxu1  ;;  %1687 = vmatpush.bf16.msrb.mxu0 %v2497_v46  ;;  %v2561_v19 = vor.u32 %v2873_v14, %v2558_v26  ;;  %v2596_v46 = vld [vmem:[#allocation6 + $0x110] sm:$0xf] }
  0xc9   :  { %v922_v1 = vadd.f32 %v3191_v2, %v3189_v0  ;;  %v1121_v0 = vmul.f32 %v948_v38, %v948_v38 }
  0xca   :  { %1701 = vmatpush.bf16.msrb.mxu1 %v2561_v19 }
  0xcb   :  { %v1124_v29 = vmul.f32 %v922_v1, %v922_v1  ;;  %v2869_v1 = vld [vmem:[#allocation6 + $0xa4] sm:$0xf] }
  0xcc   :  { %v3193_v13 = vpop.f32.mrf.mxu2  ;;  %1688 = vmatpush.bf16.msrb.mxu0 %v2489_v11 }
  0xce   :  { %v3195_v17 = vpop.f32.mrf.mxu3 }
  0xd8   :  { %v3197_v18 = vpop.f32.mrf.mxu0 }
  0xda   :  { %v3199_v20 = vpop.f32.mrf.mxu1 }
  0xde   :  { %v3201_v33 = vpop.f32.mrf.mxu2 }
  0xe0   :  { %v3203_v36 = vpop.f32.mrf.mxu3  ;;  %v3205_v42 = vpop.f32.mrf.mxu0 }
  0xe2   :  { %v3207_v47 = vpop.f32.mrf.mxu1 }
  0xe6   :  { %v3209_v7 = vpop.f32.mrf.mxu2 }
  0xe8   :  { %v3211_v10 = vpop.f32.mrf.mxu3 }
  0xf8   :  { %v1017_v23 = vpop.f32.mrf.mxu0 }
  0xfa   :  { %v1031_v31 = vpop.f32.mrf.mxu1 }
  0xfb   :  { %v1032_v35 = vadd.f32 %v1031_v31, %v1017_v23  ;;  %v2853_v23 = vld [vmem:[#allocation6 + $0x24] sm:$0xf] }
  0xfc   :  { %v2481_v31 = vor.u32 %v2853_v23, %v2478_v28  ;;  %v2646_v23 = vld [vmem:[#allocation6 + $0x178] sm:$0xf0] }
  0xfd   :  { %v1128_v56 = vmul.f32 %v1032_v35, %v1032_v35  ;;  %v950_v35 = vadd.f32 %v3195_v17, %v3193_v13  ;;  %v2884_v13 = vld [vmem:[#allocation6 + $0x114] sm:$0xf0]  ;;  %v2851_v17 = vld [vmem:[#allocation6 + $0x14] sm:$0xf] }
  0xfe   :  { %v1045_v61 = vpop.f32.mrf.mxu2  ;;  %1689 = vmatpush.bf16.msrb.mxu0 %v2481_v31  ;;  %v2597_v57 = vor.u32 %v2884_v13, %v2596_v46  ;;  %v2473_v62 = vor.u32 %v2851_v17, %v2470_v58  ;;  %v2865_v46 = vld [vmem:[#allocation6 + $0x84] sm:$0xf]  ;;  %v2911_v13 = vld [vmem:[#allocation6 + $0x1f4] sm:$0xf] }
  0xff   :  { %v3215_v53 = vadd.f32 %v1128_v56, %v1120_v54  ;;  %v2550_v54 = vld [vmem:[#allocation6 + $0xb8] sm:$0xf0]  ;;  %v1125_v51 = vmul.f32 %v950_v35, %v950_v35  ;;  %v2649_v35 = vor.u32 %v2895_v16, %v2646_v23 }
 0x100   :  { %v1059_v3 = vpop.f32.mrf.mxu3  ;;  %v1019_v4 = vpop.f32.mrf.mxu0  ;;  %v2553_v52 = vor.u32 %v2871_v45, %v2550_v54  ;;  %1662 = vmatpush.bf16.msra.mxu2 %v2597_v57  ;;  %v2710_v57 = vld [vmem:[#allocation6 + $0x1f8] sm:$0xf0] }
 0x101   :  { %2926 = vrsqrt.f32 %v3215_v53  ;;  %v1060_v8 = vadd.f32 %v1059_v3, %v1045_v61  ;;  %v2542_v3 = vld [vmem:[#allocation6 + $0xa8] sm:$0xf0]  ;;  %vm1151_vm6 = vcmp.eq.f32.partialorder %v3215_v53, inf  ;;  %vm1153_vm7 = vcmp.eq.f32.partialorder %v3215_v53, 0.0 }
 0x102   :  { %v1033_v9 = vpop.f32.mrf.mxu1  ;;  %1702 = vmatpush.bf16.msrb.mxu1 %v2553_v52  ;;  %1690 = vmatpush.bf16.msrb.mxu0 %v2473_v62  ;;  %v2891_v62 = vld [vmem:[#allocation6 + $0x154] sm:$0xf] }
 0x103   :  { %v1034_v39 = vadd.f32 %v1033_v9, %v1019_v4  ;;  %v1129_v2 = vmul.f32 %v1060_v8, %v1060_v8  ;;  %v2545_v4 = vor.u32 %v2869_v1, %v2542_v3  ;;  %v2882_v8 = vld [vmem:[#allocation6 + $0x104] sm:$0xf0]  ;;  %v2849_v9 = vld [vmem:[#allocation6 + $0x4] sm:$0xf]  ;;  %v1004_v1 = vadd.f32 %v3203_v36, %v3201_v33 }
 0x104   :  { %v2589_v26 = vor.u32 %v2882_v8, %v2588_v5  ;;  %v2633_v5 = vor.u32 %v2891_v62, %v2630_v63  ;;  %v2909_v8 = vld [vmem:[#allocation6 + $0x1e4] sm:$0xf] }
 0x105   :  { %v1132_v30 = vmul.f32 %v1034_v39, %v1034_v39  ;;  %v3222_v32 = vadd.f32 %v1129_v2, %v1121_v0  ;;  %v2462_v39 = vld [vmem:[#allocation6 + $0x8] sm:$0xf0]  ;;  %v2660_v0 = vld [vmem:[#allocation6 + $0x190] sm:$0xf]  ;;  %v2900_v2 = vld [vmem:[#allocation6 + $0x194] sm:$0xf0] }
 0x106   :  { %v1047_v43 = vpop.f32.mrf.mxu2  ;;  %v2465_v22 = vor.u32 %v2849_v9, %v2462_v39  ;;  %1703 = vmatpush.bf16.msrb.mxu1 %v2545_v4  ;;  %1663 = vmatpush.bf16.msra.mxu2 %v2589_v26  ;;  %v2661_v45 = vor.u32 %v2900_v2, %v2660_v0  ;;  %v2702_v9 = vld [vmem:[#allocation6 + $0x1e8] sm:$0xf0]  ;;  %v1154_v2 = vand.u32 2147483648, %v3215_v53 }
 0x107   :  { %v2927_v34 = vpop.eup %2926  ;;  %v3226_v37 = vadd.f32 %v1132_v30, %v1124_v29  ;;  %2928 = vrsqrt.f32 %v3222_v32  ;;  %v2867_v29 = vld [vmem:[#allocation6 + $0x94] sm:$0xf]  ;;  %v2534_v30 = vld [vmem:[#allocation6 + $0x98] sm:$0xf0]  ;;  %v2705_v23 = vor.u32 %v2909_v8, %v2702_v9  ;;  %vm1163_vm10 = vcmp.eq.f32.partialorder %v3222_v32, inf }
 0x108   :  { %v1145_v44 = vmul.f32 %v2927_v34, %v3215_v53  ;;  %v1061_v56 = vpop.f32.mrf.mxu3  ;;  %1691 = vmatpush.bf16.msrb.mxu0 %v2465_v22  ;;  %v2537_v54 = vor.u32 %v2867_v29, %v2534_v30  ;;  %1676 = vmatpush.bf16.msra.mxu3 %v2661_v45  ;;  %v2622_v22 = vld [vmem:[#allocation6 + $0x148] sm:$0xf0]  ;;  %v2614_v45 = vld [vmem:[#allocation6 + $0x138] sm:$0xf0]  ;;  %vm1165_vm11 = vcmp.eq.f32.partialorder %v3222_v32, 0.0 }
 0x109   :  { %2930 = vrsqrt.f32 %v3226_v37  ;;  %v1062_v48 = vadd.f32 %v1061_v56, %v1047_v43  ;;  %v976_v43 = vadd.f32 %v3199_v20, %v3197_v18  ;;  %v2898_v56 = vld [vmem:[#allocation6 + $0x184] sm:$0xf0]  ;;  %v2529_v18 = vor.u32 %v2865_v46, %v2526_v50  ;;  %v2905_v46 = vld [vmem:[#allocation6 + $0x1c4] sm:$0xf] }
 0x10a   :  { %v1146_v49 = vmul.f32 %v2927_v34, %v1145_v44  ;;  %1712 = vmatpush.bf16.msrb.mxu2 %v2649_v35  ;;  %1704 = vmatpush.bf16.msrb.mxu1 %v2537_v54  ;;  %v2713_v20 = vor.u32 %v2911_v13, %v2710_v57  ;;  %vm1199_vm8 = vcmp.eq.f32.partialorder %v3226_v37, inf  ;;  %vm1201_vm9 = vcmp.eq.f32.partialorder %v3226_v37, 0.0  ;;  %v2885_v57 = vld [vmem:[#allocation6 + $0x124] sm:$0xf] }
 0x10b   :  { %v1133_v38 = vmul.f32 %v1062_v48, %v1062_v48  ;;  %v1122_v60 = vmul.f32 %v976_v43, %v976_v43 }
 0x10c   :  { %v1147_v61 = vmul.f32 0.5, %v1146_v49  ;;  %v2641_v49 = vor.u32 %v2893_v40, %v2638_v41 }
 0x10d   :  { %v3231_v11 = vpop.eup %2928  ;;  %v3233_v12 = vadd.f32 %v1133_v38, %v1125_v51 }
 0x10e   :  { %v1148_v14 = vsub.f32 1.5, %v1147_v61  ;;  %v1157_v21 = vmul.f32 %v3231_v11, %v3222_v32  ;;  %1713 = vmatpush.bf16.msrb.mxu2 %v2641_v49  ;;  %1705 = vmatpush.bf16.msrb.mxu1 %v2529_v18  ;;  %v1123_v49 = vmul.f32 %v1004_v1, %v1004_v1 }
 0x10f   :  { %v2931_v19 = vpop.eup %2930  ;;  %2932 = vrsqrt.f32 %v3233_v12  ;;  %vm1211_vm12 = vcmp.eq.f32.partialorder %v3233_v12, inf  ;;  %v1214_v62 = vand.u32 2147483648, %v3233_v12  ;;  %vm1213_vm13 = vcmp.eq.f32.partialorder %v3233_v12, 0.0 }
 0x110   :  { %v1149_v27 = vmul.f32 %v2927_v34, %v1148_v14  ;;  %v1193_v28 = vmul.f32 %v2931_v19, %v3226_v37  ;;  %v1158_v31 = vmul.f32 %v3231_v11, %v1157_v21  ;;  %v2652_v34 = vld [vmem:[#allocation6 + $0x180] sm:$0xf]  ;;  %v978_v14 = vadd.f32 %v3207_v47, %v3205_v42  ;;  %v2889_v21 = vld [vmem:[#allocation6 + $0x144] sm:$0xf]  ;;  %v2907_v47 = vld [vmem:[#allocation6 + $0x1d4] sm:$0xf] }
 0x111   :  { %v2653_v52 = vor.u32 %v2898_v56, %v2652_v34 }
 0x112   :  { %v1194_v44 = vmul.f32 %v2931_v19, %v1193_v28  ;;  %v1159_v48 = vmul.f32 0.5, %v1158_v31  ;;  %v1150_v17 = vmul.f32 %v1149_v27, %v3215_v53  ;;  %v2694_v27 = vld [vmem:[#allocation6 + $0x1d8] sm:$0xf0]  ;;  %1714 = vmatpush.bf16.msrb.mxu2 %v2633_v5 }
 0x113   :  { %1677 = vmatpush.bf16.msra.mxu3 %v2653_v52  ;;  %v2697_v43 = vor.u32 %v2907_v47, %v2694_v27  ;;  %v2590_v47 = vld [vmem:[#allocation6 + $0x108] sm:$0xf0] }
 0x114   :  { %v1195_v51 = vmul.f32 0.5, %v1194_v44  ;;  %v1160_v58 = vsub.f32 1.5, %v1159_v48  ;;  %v1152_v39 = vsel %vm1151_vm6, %v3215_v53, %v1150_v17  ;;  %v2887_v44 = vld [vmem:[#allocation6 + $0x134] sm:$0xf]  ;;  %v2686_v48 = vld [vmem:[#allocation6 + $0x1c8] sm:$0xf0] }
 0x115   :  { %v2933_v59 = vpop.eup %2932  ;;  %v1155_v30 = vsel %vm1153_vm7, %v1154_v2, %v1152_v39  ;;  %v2617_v17 = vor.u32 %v2887_v44, %v2614_v45  ;;  %v2670_v2 = vld [vmem:[#allocation6 + $0x1a8] sm:$0xf0] }
 0x116   :  { %v1196_v61 = vsub.f32 1.5, %v1195_v51  ;;  %v1205_v4 = vmul.f32 %v2933_v59, %v3233_v12  ;;  %v1161_v33 = vmul.f32 %v3231_v11, %v1160_v58  ;;  %v2625_v11 = vor.u32 %v2889_v21, %v2622_v22  ;;  %v2606_v58 = vld [vmem:[#allocation6 + $0x128] sm:$0xf0]  ;;  %v2883_v22 = vld [vmem:[#allocation6 + $0x114] sm:$0xf] }
 0x117   :  { %1726 = vmatpush.bf16.msrb.mxu3 %v2713_v20  ;;  %v1126_v51 = vmul.f32 %v978_v14, %v978_v14  ;;  %v2903_v14 = vld [vmem:[#allocation6 + $0x1b4] sm:$0xf] }
 0x118   :  { %v1073_v38 = vpop.f32.mrf.mxu0  ;;  %v1197_v16 = vmul.f32 %v2931_v19, %v1196_v61  ;;  %v1206_v36 = vmul.f32 %v2933_v59, %v1205_v4  ;;  %v1202_v19 = vand.u32 2147483648, %v3226_v37  ;;  %v1162_v40 = vmul.f32 %v1161_v33, %v3222_v32  ;;  %1715 = vmatpush.bf16.msrb.mxu2 %v2625_v11  ;;  %v2598_v33 = vld [vmem:[#allocation6 + $0x118] sm:$0xf0] }
 0x119   :  { %v1166_v61 = vand.u32 2147483648, %v3222_v32 }
 0x11a   :  { %v1087_v3 = vpop.f32.mrf.mxu1  ;;  %v1198_v42 = vmul.f32 %v1197_v16, %v3226_v37  ;;  %v1207_v28 = vmul.f32 0.5, %v1206_v36  ;;  %v1164_v20 = vsel %vm1163_vm10, %v3222_v32, %v1162_v40  ;;  %v2899_v40 = vld [vmem:[#allocation6 + $0x194] sm:$0xf]  ;;  %vm96_vm10 = vcmp.eq.s32.totalorder %v3119_v25, 0 }
 0x11b   :  { %v1088_v26 = vadd.f32 %v1087_v3, %v1073_v38  ;;  %1727 = vmatpush.bf16.msrb.mxu3 %v2705_v23  ;;  %v2689_v38 = vor.u32 %v2905_v46, %v2686_v48  ;;  %v2609_v3 = vor.u32 %v2885_v57, %v2606_v58  ;;  %v1167_v8 = vsel %vm1165_vm11, %v1166_v61, %v1164_v20 }
 0x11c   :  { %v1200_v31 = vsel %vm1199_vm8, %v3226_v37, %v1198_v42  ;;  %v1208_v41 = vsub.f32 1.5, %v1207_v28  ;;  %1716 = vmatpush.bf16.msrb.mxu2 %v2617_v17  ;;  %v2881_v42 = vld [vmem:[#allocation6 + $0x104] sm:$0xf]  ;;  %vm1758_vm8 = vcmp.lt.s32.totalorder %v3100_v6, 5 }
 0x11d   :  { %v1130_v0 = vmul.f32 %v1088_v26, %v1088_v26  ;;  %v1203_v53 = vsel %vm1201_vm9, %v1202_v19, %v1200_v31  ;;  %v1006_v26 = vadd.f32 %v3211_v10, %v3209_v7  ;;  %v2601_v10 = vor.u32 %v2883_v22, %v2598_v33 }
 0x11e   :  { %v1101_v35 = vpop.f32.mrf.mxu2  ;;  %v3262_v56 = vpack.c.bf16 %v1203_v53, %v1155_v30  ;;  %v1209_v13 = vmul.f32 %v2933_v59, %v1208_v41  ;;  %v2593_v53 = vor.u32 %v2881_v42, %v2590_v47  ;;  %v2662_v41 = vld [vmem:[#allocation6 + $0x198] sm:$0xf0]  ;;  %vm1775_vm9 = vcmp.lt.s32.totalorder %v3109_v15, 10 }
 0x11f   :  { %v3256_v29 = vadd.f32 %v1130_v0, %v1122_v60  ;;  %1728 = vmatpush.bf16.msrb.mxu3 %v2697_v43  ;;  %v2901_v0 = vld [vmem:[#allocation6 + $0x1a4] sm:$0xf]  ;;  %v1127_v27 = vmul.f32 %v1006_v26, %v1006_v26 }
 0x120   :  { %v1115_v54 = vpop.f32.mrf.mxu3  ;;  %v1075_v34 = vpop.f32.mrf.mxu0  ;;  %1636 = vmatmul.bf16.vlgmr.msra.gmra.mxu0 %v3262_v56  ;;  %v1210_v60 = vmul.f32 %v1209_v13, %v3233_v12  ;;  %1717 = vmatpush.bf16.msrb.mxu2 %v2609_v3  ;;  %v2673_v11 = vor.u32 %v2901_v0, %v2670_v2 }
 0x121   :  { %2934 = vrsqrt.f32 %v3256_v29  ;;  %v1116_v50 = vadd.f32 %v1115_v54, %v1101_v35  ;;  %vm1175_vm14 = vcmp.eq.f32.partialorder %v3256_v29, inf  ;;  %v1178_v61 = vand.u32 2147483648, %v3256_v29 }
 0x122   :  { %v1089_v37 = vpop.f32.mrf.mxu1  ;;  %v1212_v1 = vsel %vm1211_vm12, %v3233_v12, %v1210_v60  ;;  %v2678_v12 = vld [vmem:[#allocation6 + $0x1b8] sm:$0xf0]  ;;  %vm1177_vm0 = vcmp.eq.f32.partialorder %v3256_v29, 0.0 }
 0x123   :  { %v1090_v52 = vadd.f32 %v1089_v37, %v1075_v34  ;;  %v1131_v18 = vmul.f32 %v1116_v50, %v1116_v50  ;;  %v1215_v9 = vsel %vm1213_vm13, %v1214_v62, %v1212_v1  ;;  %1729 = vmatpush.bf16.msrb.mxu3 %v2689_v38  ;;  %v2681_v7 = vor.u32 %v2903_v14, %v2678_v12  ;;  %v2654_v50 = vld [vmem:[#allocation6 + $0x188] sm:$0xf0] }
 0x124   :  { %v1241_v16 = vpack.c.bf16 %v1215_v9, %v1167_v8  ;;  %1718 = vmatpush.bf16.msrb.mxu2 %v2601_v10  ;;  %v2665_v34 = vor.u32 %v2899_v40, %v2662_v41 }
 0x125   :  { %v1134_v59 = vmul.f32 %v1090_v52, %v1090_v52  ;;  %v3272_v63 = vadd.f32 %v1131_v18, %v1123_v49  ;;  %v2897_v49 = vld [vmem:[#allocation6 + $0x184] sm:$0xf] }
 0x126   :  { %v1103_v39 = vpop.f32.mrf.mxu2  ;;  %1650 = vmatmul.bf16.vlgmr.msra.gmra.mxu1 %v1241_v16 }
 0x127   :  { %v2935_v4 = vpop.eup %2934  ;;  %v3276_v5 = vadd.f32 %v1134_v59, %v1126_v51  ;;  %2936 = vrsqrt.f32 %v3272_v63  ;;  %1730 = vmatpush.bf16.msrb.mxu3 %v2681_v7  ;;  %v2657_v51 = vor.u32 %v2897_v49, %v2654_v50  ;;  %vm1187_vm4 = vcmp.eq.f32.partialorder %v3272_v63, inf  ;;  %v1791_v50 = vld [vmem:[%s3368_s1 + $0x8] sm:$0x3] }
 0x128   :  { %v1169_v21 = vmul.f32 %v2935_v4, %v3256_v29  ;;  %v1117_v36 = vpop.f32.mrf.mxu3  ;;  %1719 = vmatpush.bf16.msrb.mxu2 %v2593_v53  ;;  %v1190_v12 = vand.u32 2147483648, %v3272_v63  ;;  %vm1189_vm6 = vcmp.eq.f32.partialorder %v3272_v63, 0.0  ;;  %v1787_v53 = vstv %s2718_s26 }
 0x129   :  { %2938 = vrsqrt.f32 %v3276_v5  ;;  %v1118_v32 = vadd.f32 %v1117_v36, %v1103_v39  ;;  %vm1223_vm15 = vcmp.eq.f32.partialorder %v3276_v5, inf  ;;  %v1226_v62 = vand.u32 2147483648, %v3276_v5 }
 0x12a   :  { %v1170_v23 = vmul.f32 %v2935_v4, %v1169_v21  ;;  %vm1225_vm3 = vcmp.eq.f32.partialorder %v3276_v5, 0.0  ;;  %v1789_v49 = vsel %vm1775_vm9, %v1787_v53, 0.0 }
 0x12b   :  { %v1135_v19 = vmul.f32 %v1118_v32, %v1118_v32  ;;  %1731 = vmatpush.bf16.msrb.mxu3 %v2673_v11  ;;  %v1771_v11 = vstv %s2715_s24 }
 0x12c   :  { %v1171_v28 = vmul.f32 0.5, %v1170_v23 }
 0x12d   :  { %v2937_v30 = vpop.eup %2936  ;;  %v1143_v31 = vadd.f32 %v1135_v19, %v1127_v27 }
 0x12e   :  { %v1172_v35 = vsub.f32 1.5, %v1171_v28  ;;  %v1181_v44 = vmul.f32 %v2937_v30, %v3272_v63  ;;  %v1767_v28 = vstv %s2714_s23 }
 0x12f   :  { %v2939_v43 = vpop.eup %2938  ;;  %2940 = vrsqrt.f32 %v1143_v31  ;;  %1732 = vmatpush.bf16.msrb.mxu3 %v2665_v34  ;;  %vm1235_vm5 = vcmp.eq.f32.partialorder %v1143_v31, inf  ;;  %vm1237_vm7 = vcmp.eq.f32.partialorder %v1143_v31, 0.0  ;;  %v1790_v34 = vld [vmem:[%s3368_s1] sm:$0xff]  ;;  %s3337_s1 = sld [smem:[#allocation8 + $0x2]] }
 0x130   :  { %v1217_v45 = vmul.f32 %v2939_v43, %v3276_v5  ;;  %v1182_v54 = vmul.f32 %v2937_v30, %v1181_v44  ;;  %v1173_v46 = vmul.f32 %v2935_v4, %v1172_v35  ;;  %1692 = vmatmul.bf16.vlgmr.msrb.gmra.mxu0 %v3262_v56  ;;  %v1783_v35 = vstv %s2717_s25 }
 0x132   :  { %v1218_v48 = vmul.f32 %v2939_v43, %v1217_v45  ;;  %v1183_v37 = vmul.f32 0.5, %v1182_v54  ;;  %v1174_v57 = vmul.f32 %v1173_v46, %v3256_v29  ;;  %v1785_v45 = vsel %vm1775_vm9, %v1783_v35, 0.0 }
 0x133   :  { %1733 = vmatpush.bf16.msrb.mxu3 %v2657_v51 }
 0x134   :  { %v1219_v13 = vmul.f32 0.5, %v1218_v48  ;;  %v1184_v17 = vsub.f32 1.5, %v1183_v37  ;;  %v1176_v59 = vsel %vm1175_vm14, %v3256_v29, %v1174_v57  ;;  %v1238_v29 = vand.u32 2147483648, %v1143_v31 }
 0x135   :  { %v2941_v52 = vpop.eup %2940  ;;  %v1179_v4 = vsel %vm1177_vm0, %v1178_v61, %v1176_v59  ;;  %v1763_v59 = vstv %s3304_s27 }
 0x136   :  { %v1220_v58 = vsub.f32 1.5, %v1219_v13  ;;  %v1229_v18 = vmul.f32 %v2941_v52, %v1143_v31  ;;  %v1185_v60 = vmul.f32 %v2937_v30, %v1184_v17  ;;  %1706 = vmatmul.bf16.vlgmr.msrb.gmra.mxu1 %v1241_v16  ;;  %v1768_v30 = vsel %vm1758_vm8, %v1767_v28, 0.0 }
 0x137   :  { %v1784_v44 = vsel %vm88_vm1, %v1783_v35, %v1768_v30 }
 0x138   :  { %v1221_v20 = vmul.f32 %v2939_v43, %v1220_v58  ;;  %v1230_v38 = vmul.f32 %v2941_v52, %v1229_v18  ;;  %v1186_v9 = vmul.f32 %v1185_v60, %v3272_v63  ;;  %v2943_v58 = vld [vmem:[%s3367_s0 + $0x8] sm:$0x3]  ;;  %v87_v60 = vand.u32 127, %v83_v55 }
 0x139   :  { %v1793_v18 = vmul.f32 %v2943_v58, %v1785_v45  ;;  %v1779_v55 = vstv %s3313_s29  ;;  %v1798_v28 = vmul.f32 %v1790_v34, %v1784_v44 }
 0x13a   :  { %v1222_v56 = vmul.f32 %v1221_v20, %v3276_v5  ;;  %v1231_v1 = vmul.f32 0.5, %v1230_v38  ;;  %v1188_v16 = vsel %vm1187_vm4, %v3272_v63, %v1186_v9  ;;  %v98_v38 = vmul.u32 128, %v3119_v25 }
 0x13b   :  { %v1191_v22 = vsel %vm1189_vm6, %v1190_v12, %v1188_v16 }
 0x13c   :  { %v1224_v3 = vsel %vm1223_vm15, %v3276_v5, %v1222_v56  ;;  %v1232_v14 = vsub.f32 1.5, %v1231_v1  ;;  %v1795_v56 = vmul.f32 %v1791_v50, %v1789_v49  ;;  %v100_v16 = vadd.s32 %v98_v38, %v87_v60 }
 0x13d   :  { %v1227_v8 = vsel %vm1225_vm3, %v1226_v62, %v1224_v3  ;;  %vm1826_vm15 = vcmask 1041408  }
 0x13e   :  { %v1242_v26 = vpack.c.bf16 %v1227_v8, %v1179_v4  ;;  %v1233_v39 = vmul.f32 %v2941_v52, %v1232_v14  ;;  %v2942_v52 = vld [vmem:[%s3367_s0] sm:$0xff]  ;;  %v99_v8 = vmul.u32 128, %v3114_v24  ;;  %v1809_v14 = vstv %s3311_s28 }
 0x13f   :  { %v1792_v57 = vmul.f32 %v2942_v52, %v1784_v44  ;;  %v1797_v12 = vadd.f32 %v1795_v56, %v1793_v18  ;;  %vm102_vm11 = vcmp.ge.s32.totalorder %v100_v16, 48  ;;  %vm104_vm12 = vcmp.lt.s32.totalorder %v100_v16, 560 }
 0x140   :  { %1664 = vmatmul.bf16.vlgmr.msra.gmra.mxu2 %v1242_v26  ;;  %v1234_v21 = vmul.f32 %v1233_v39, %v1143_v31  ;;  %vm106_vm14 = vmand %vm102_vm11, %vm104_vm12 }
 0x142   :  { %v1236_v5 = vsel %vm1235_vm5, %v1143_v31, %v1234_v21  ;;  %v1772_v31 = vsel %vm1758_vm8, %v1771_v11, 0.0 }
 0x143   :  { %v1239_v33 = vsel %vm1237_vm7, %v1238_v29, %v1236_v5  ;;  %v1788_v54 = vsel %vm88_vm1, %v1787_v53, %v1772_v31 }
 0x144   :  { %v1243_v36 = vpack.c.bf16 %v1239_v33, %v1191_v22  ;;  %v1794_v20 = vmul.f32 %v1790_v34, %v1788_v54  ;;  %v1805_v33 = vstv %s3329_s11  ;;  %v1800_v11 = vmul.f32 %v2942_v52, %v1788_v54 }
 0x146   :  { %1678 = vmatmul.bf16.vlgmr.msra.gmra.mxu3 %v1243_v36  ;;  %v1796_v21 = vadd.f32 %v1794_v20, %v1792_v57 }
 0x148   :  { %v1806_v6 = vmul.f32 %v1805_v33, %v1796_v21 }
 0x150   :  { %1720 = vmatmul.bf16.vlgmr.msrb.gmra.mxu2 %v1242_v26  ;;  %v1764_v26 = vsel %vm1758_vm8, %v1763_v59, 0.0 }
 0x151   :  { %v1780_v24 = vsel %vm88_vm1, %v1779_v55, %v1764_v26 }
 0x156   :  { %1734 = vmatmul.bf16.vlgmr.msrb.gmra.mxu3 %v1243_v36 }
 0x19d   :  { %v1637_v23 = vpop.f32.mrf.mxu0 }
 0x1a3   :  { %v1651_v32 = vpop.f32.mrf.mxu1 }
 0x1a4   :  { %v1652_v43 = vadd.f32 %v1651_v32, %v1637_v23  ;;  %v101_v32 = vadd.s32 %v99_v8, %v87_v60  ;;  %v1781_v23 = vsel %vm1775_vm9, %v1779_v55, 0.0 }
 0x1a5   :  { %v1639_v7 = vpop.f32.mrf.mxu0 }
 0x1a6   :  { %vm103_vm1 = vcmp.ge.s32.totalorder %v101_v32, 48 }
 0x1ab   :  { %v1653_v2 = vpop.f32.mrf.mxu1 }
 0x1ac   :  { %v1654_v1 = vadd.f32 %v1653_v2, %v1639_v7  ;;  %v1799_v7 = vmul.f32 %v1791_v50, %v1785_v45 }
 0x1ad   :  { %v1693_v27 = vpop.f32.mrf.mxu0 }
 0x1b3   :  { %v1707_v47 = vpop.f32.mrf.mxu1 }
 0x1b4   :  { %v1708_v46 = vadd.f32 %v1707_v47, %v1693_v27  ;;  %v1801_v27 = vmul.f32 %v2943_v58, %v1789_v49 }
 0x1b5   :  { %v1695_v48 = vpop.f32.mrf.mxu0 }
 0x1b6   :  { %v1803_v35 = vsub.f32 %v1799_v7, %v1801_v27 }
 0x1bb   :  { %v1709_v41 = vpop.f32.mrf.mxu1 }
 0x1bc   :  { %v1710_v37 = vadd.f32 %v1709_v41, %v1695_v48 }
 0x1c3   :  { %v1665_v0 = vpop.f32.mrf.mxu2 }
 0x1c4   :  { %v1666_v13 = vadd.f32 %v1665_v0, %v1652_v43 }
 0x1c9   :  { %v1679_v10 = vpop.f32.mrf.mxu3 }
 0x1ca   :  { %v1680_v3 = vadd.f32 %v1679_v10, %v1666_v13  ;;  %v1815_v10 = vstv %s3337_s1 }
 0x1cb   :  { %v1667_v42 = vpop.f32.mrf.mxu2  ;;  %v1817_v30 = vmul.f32 %v1815_v10, %v1781_v23  ;;  %v1816_v25 = vmul.f32 %v1815_v10, %v1780_v24 }
 0x1cc   :  { %v1668_v39 = vadd.f32 %v1667_v42, %v1654_v1 }
 0x1d1   :  { %v1681_v63 = vpop.f32.mrf.mxu3 }
 0x1d2   :  { %v1682_v36 = vadd.f32 %v1681_v63, %v1668_v39 }
 0x1d3   :  { %v1721_v19 = vpop.f32.mrf.mxu2 }
 0x1d4   :  { %v1722_v51 = vadd.f32 %v1721_v19, %v1708_v46  ;;  %v1807_v19 = vmul.f32 %v1805_v33, %v1797_v12 }
 0x1d9   :  { %v1735_v40 = vpop.f32.mrf.mxu3 }
 0x1da   :  { %v1736_v61 = vadd.f32 %v1735_v40, %v1722_v51  ;;  %v1802_v40 = vsub.f32 %v1798_v28, %v1800_v11 }
 0x1db   :  { %v1723_v17 = vpop.f32.mrf.mxu2 }
 0x1dc   :  { %v1724_v62 = vadd.f32 %v1723_v17, %v1710_v37  ;;  %v1744_v29 = vrot.slane %v1736_v61, 7 }
 0x1e1   :  { %v1737_v4 = vpop.f32.mrf.mxu3 }
 0x1e2   :  { %v1738_v9 = vadd.f32 %v1737_v4, %v1724_v62 }
 0x1e4   :  { %v1741_v5 = vrot.slane %v1738_v9, 1  ;;  %v1745_v22 = vrot.slane %v1738_v9, 7 }
 0x1e6   :  { %v1746_v0 = vsel %vm122_vm2, %v1744_v29, %v1745_v22  ;;  %v1749_v2 = vsel %vm122_vm2, %v1741_v5, %v1744_v29  ;;  %vm105_vm2 = vcmp.lt.s32.totalorder %v101_v32, 560 }
 0x1e7   :  { %v1750_v42 = vsel %vm96_vm10, 0.0, %v1749_v2  ;;  %v1753_v47 = vadd.f32 %v1746_v0, %v1682_v36  ;;  %vm107_vm13 = vmand %vm103_vm1, %vm105_vm2 }
 0x1e8   :  { %v1752_v63 = vadd.f32 %v1750_v42, %v1680_v3 }
 0x1e9   :  { %1755 = vst [vmem:[%s3374_s7 + $0x8] sm:$0x3] %v1753_v47  ;;  %v1811_v15 = vmul.f32 %v1809_v14, %v1753_v47 }
 0x1ea   :  { %1754 = vst [vmem:[%s3374_s7] sm:$0xff] %v1752_v63  ;;  %v1810_v31 = vmul.f32 %v1809_v14, %v1752_v63 }
 0x1eb   :  { %v1813_v53 = vadd.f32 %v1811_v15, %v1807_v19 }
 0x1ec   :  { %v1812_v41 = vadd.f32 %v1810_v31, %v1806_v6 }
 0x1ed   :  { %v1819_v43 = vadd.f32 %v1817_v30, %v1813_v53 }
 0x1ee   :  { %v1818_v44 = vadd.f32 %v1816_v25, %v1812_v41 }
 0x1ef   :  { %v1821_v45 = vsub.f32 %v1819_v43, %v1803_v35 }
 0x1f0   :  { %v1820_v54 = vsub.f32 %v1818_v44, %v1802_v40 }
 0x1f1   :  { %v1823_v34 = vsel %vm107_vm13, %v1821_v45, 0.0 }
 0x1f2   :  { %v1822_v46 = vsel %vm106_vm14, %v1820_v54, 0.0  ;;  %v1825_v48 = vmul.f32 %v1823_v34, %v1823_v34 }
 0x1f3   :  { %v1824_v49 = vmul.f32 %v1822_v46, %v1822_v46 }
 0x1f4   :  { %v1827_v50 = vsel %vm1826_vm15, %v1825_v48, 0.0 }
 0x1f5   :  { %v1828_v37 = vadd.f32 %v1827_v50, %v1824_v49 }
 0x1f7   :  { %1829 = vadd.xlane.f32.xlu0 %v1828_v37 }
 0x26a   :  { %v1830_v13 = vpop.xlane.xlu0 %1829 }
 0x26b   :  { %v1831_v17 = vrot.slane %v1830_v13, 4 }
 0x26d   :  { %v1832_v51 = vadd.f32 %v1831_v17, %v1830_v13 }
 0x26f   :  { %v1833_v52 = vrot.slane %v1832_v51, 2 }
 0x271   :  { %v1834_v57 = vadd.f32 %v1833_v52, %v1832_v51 }
 0x273   :  { %v1835_v58 = vrot.slane %v1834_v57, 1 }
 0x275   :  { %v1836_v18 = vadd.f32 %v1835_v58, %v1834_v57 }
 0x277   :  { %2915 = vpush %v1836_v18 }
 0x2a8   :  { %s2916_s3 = spop %2915 }
 0x2a9   :  { %s1838_s20 = smul.f32 0.0009765625, %s2916_s3 }
 0x2ab   :  { %1840 = sst [smem:[#allocation11]] %s1838_s20 }
 0x2ac   :  { %1849 = dma.smem_to_hbm %s3046_s4, 16, %s1847_s19, [#allocation4]  }
 0x2ad   :  { %3036 = dma.done.wait [#allocation4], 16  }
 0x2ae   :  { %3037 = vsyncadd [#allocation4], 4294967280 }
 0x2af   :  { %1858 = sfence }
 0x2b0   :  { %1859 = vsyncpa [#allocation3], 1 }
 0x2b1   :  { %1860 = vsyncpa [#allocation7], 1 }
 0x2b2   :  { %1861 = vsyncpa [#allocation4], 1 }
 0x2b3   :  { %1862 = vsyncpa [#allocation5], 1 }
 0x2b4   :  { %1863 = vsyncpa [#allocation10], 1 }

</bundles_post_ra>
